<compile_context>
chip_gen: v7x
topology: tpu7x:2x2x1
jax: 0.10.0
libtpu: 0.0.40
codegen_flags: <defaults>
</compile_context>

<pallas_src>
import numpy as np
import jax
import jax.numpy as jnp
from jax.experimental import pallas as pl
from jax.experimental.pallas import tpu as pltpu


def _round_up(v, m):
    return (v + m - 1) // m * m


def _make_kernel(B, H, W, Cin_p, Cout_p):
    Wp = W + 2
    H2, W2 = H // 2, W // 2
    M = H * Wp                       # conv window: padded rows 1..H, all Wp columns
    HW2 = H2 * W2
    offs = [dy * Wp + dx for dy in range(3) for dx in range(3)]
    bf16 = jnp.bfloat16

    def leaky(v):
        return jnp.where(v >= 0, v, 0.2 * v)

    def kernel(x_ref, xres_ref, w1_ref, w2_ref, wres_ref,
               b1_ref, b2_ref, resb_ref, mask_ref, pool_ref,
               out_ref, h1buf_ref, im1_ref, im2_ref):
        # ---- residual CoordConv 1x1 stride 2 for ALL batches at once (lane-dense N=B*HW2)
        res = jnp.dot(wres_ref[...], xres_ref[...],
                      preferred_element_type=jnp.float32) + resb_ref[...]   # (Cout_p, B*HW2)

        # zero the padded conv-2 input buffer once (top/bottom pad rows + slack stay zero)
        h1buf_ref[...] = jnp.zeros_like(h1buf_ref)

        pooled = []
        for b in range(B):                                   # static unroll over the batch
            # ---- CoordConv #1 (3x3, pad=1): 9 taps staged into a VMEM im2col scratch,
            #      one MXU matmul; constant coord channels are folded into b1_ref.
            for t, off in enumerate(offs):
                im1_ref[t * Cin_p:(t + 1) * Cin_p, :] = x_ref[b, :, off:off + M]
            acc1 = jnp.dot(w1_ref[...], im1_ref[...],
                           preferred_element_type=jnp.float32)              # (Cout_p, M)
            # mask zeroes the horizontal pad columns so they act as zero-padding for conv #2
            h1 = leaky(acc1 + b1_ref[...]) * mask_ref[...]                  # f32
            h1buf_ref[:, 1 + Wp:1 + Wp + M] = h1.astype(bf16)

            # ---- CoordConv #2 (3x3, pad=1): taps from the padded VMEM buffer
            for t, off in enumerate(offs):
                im2_ref[t * Cout_p:(t + 1) * Cout_p, :] = h1buf_ref[:, off:off + M]
            acc2 = jnp.dot(w2_ref[...], im2_ref[...],
                           preferred_element_type=jnp.float32)              # (Cout_p, M)
            h2 = leaky(acc2 + b2_ref[...])                                  # f32

            # ---- AvgPool2d(2): single matmul against the block-structured pooling matrix
            pooled.append(jnp.dot(h2.astype(bf16), pool_ref[...],
                                  preferred_element_type=jnp.float32))      # (Cout_p, HW2)

        # single lane-dense store: (Cout_p, B*HW2)
        out_ref[...] = jnp.concatenate(pooled, axis=1) + res

    return kernel


def precompute_block_params(params, H, W):
    """One-time, parameter-only prep (hoisted out of the per-call path)."""
    f32, bf16 = jnp.float32, jnp.bfloat16
    w1, b1, w2, b2, wres, bres = (jnp.asarray(params[k], f32)
                                  for k in ("w1", "b1", "w2", "b2", "wres", "bres"))
    Cin = w1.shape[1] - 2
    Cout = w1.shape[2]
    H2, W2 = H // 2, W // 2
    Wp = W + 2
    M = H * Wp
    Cin_p, Cout_p = _round_up(Cin, 16), _round_up(Cout, 16)   # bf16 packed sublane layout

    # AddCoords channels (xx varies with h, yy with w, range [-1, 1]); channels-first
    xx = jnp.broadcast_to((2.0 * jnp.arange(H, dtype=f32) / (H - 1) - 1.0)[:, None], (H, W))
    yy = jnp.broadcast_to((2.0 * jnp.arange(W, dtype=f32) / (W - 1) - 1.0)[None, :], (H, W))
    coords = jnp.stack([xx, yy], axis=0)                                     # (2, H, W)

    w1_main, w1_coord = w1[:, :Cin, :], w1[:, Cin:, :]
    w2_main, w2_coord = w2[:, :Cout, :], w2[:, Cout:, :]
    wres_main, wres_coord = wres[:Cin, :], wres[Cin:, :]

    coords_pad = jnp.pad(coords, ((0, 0), (1, 1), (1, 1)))                   # (2, Hp, Wp)

    def coord_contrib(w_coord):                                              # -> (Cout, H, W)
        acc = jnp.zeros((Cout, H, W), f32)
        for dy in range(3):
            for dx in range(3):
                acc = acc + jnp.einsum("io,ihw->ohw", w_coord[dy * 3 + dx],
                                       coords_pad[:, dy:dy + H, dx:dx + W])
        return acc

    def to_window(bias_hw):            # (Cout, H, W) -> (Cout_p, M) in padded-row layout
        z = jnp.zeros((Cout, H, Wp), f32).at[:, :, 1:W + 1].set(bias_hw)
        return jnp.pad(z.reshape(Cout, M), ((0, Cout_p - Cout), (0, 0)))

    bias1 = to_window(coord_contrib(w1_coord) + b1.reshape(Cout, 1, 1))      # (Cout_p, M)
    bias2 = to_window(coord_contrib(w2_coord) + b2.reshape(Cout, 1, 1))      # (Cout_p, M)
    resb = jnp.pad(wres_coord.T @ coords[:, ::2, ::2].reshape(2, H2 * W2)
                   + bres.reshape(Cout, 1), ((0, Cout_p - Cout), (0, 0)))    # (Cout_p, HW2)

    # validity mask over the conv window (zero on the horizontal zero-padding columns)
    col = jnp.arange(M, dtype=jnp.int32) % Wp
    mask = ((col >= 1) & (col <= W)).astype(f32).reshape(1, M)

    # weight matrices in (Cout, 9*K) im2col order (column index = tap*K + channel)
    W1 = jnp.pad(jnp.transpose(w1_main, (2, 0, 1)),
                 ((0, Cout_p - Cout), (0, 0), (0, Cin_p - Cin))).reshape(Cout_p, 9 * Cin_p)
    W2m = jnp.pad(jnp.transpose(w2_main, (2, 0, 1)),
                  ((0, Cout_p - Cout), (0, 0), (0, Cout_p - Cout))).reshape(Cout_p, 9 * Cout_p)
    Wres = jnp.pad(wres_main.T, ((0, Cout_p - Cout), (0, Cin_p - Cin)))      # (Cout_p, Cin_p)

    # block-structured AvgPool2d(2) matrix: one matmul (Cout_p, M) @ (M, H2*W2)
    pool_np = np.zeros((M, H2 * W2), np.float32)
    for ho in range(H2):
        for wo in range(W2):
            for r in range(2):
                for dw in range(2):
                    pool_np[(2 * ho + r) * Wp + 1 + 2 * wo + dw, ho * W2 + wo] = 0.25
    pool = jnp.asarray(pool_np)

    return dict(
        W1=W1.astype(bf16), W2=W2m.astype(bf16), Wres=Wres.astype(bf16),
        bias1=bias1, bias2=bias2, resb=resb, mask=mask, pool=pool.astype(bf16),
        meta=dict(Cin=Cin, Cout=Cout, Cin_p=Cin_p, Cout_p=Cout_p),
    )


def discriminator_block(x_nchw, prep):
    """DiscriminatorBlock.forward (NCHW in / NCHW out) as a fused Pallas TPU kernel."""
    meta = prep["meta"]
    Cin, Cout, Cin_p, Cout_p = meta["Cin"], meta["Cout"], meta["Cin_p"], meta["Cout_p"]
    B, Cin_x, H, W = x_nchw.shape
    assert Cin_x == Cin and H % 2 == 0 and W % 2 == 0
    H2, W2 = H // 2, W // 2
    Hp, Wp = H + 2, W + 2
    Np, M = Hp * Wp, H * Wp
    L = Np + 2                       # flat padded spatial length (+1 slack each end)
    HW2 = H2 * W2
    f32, bf16 = jnp.float32, jnp.bfloat16
    x = x_nchw.astype(f32)

    # channels-first, flat zero-padded spatial layout, one slack lane at each end (bf16 MXU operand)
    xpad = jnp.pad(x, ((0, 0), (0, Cin_p - Cin), (1, 1), (1, 1)))             # (B, Cin_p, Hp, Wp)
    x_flat = jnp.pad(xpad.reshape(B, Cin_p, Np),
                     ((0, 0), (0, 0), (1, 1))).astype(bf16)                   # (B, Cin_p, L)

    # stride-2 residual samples with the batch folded along the lane axis (lane-dense N=B*HW2)
    xr = jnp.pad(x[:, :, ::2, ::2].reshape(B, Cin, HW2),
                 ((0, 0), (0, Cin_p - Cin), (0, 0)))                          # (B, Cin_p, HW2)
    x_res = jnp.transpose(xr, (1, 0, 2)).reshape(Cin_p, B * HW2).astype(bf16)

    resb_t = jnp.tile(prep["resb"], (1, B))                                   # (Cout_p, B*HW2)

    kernel = _make_kernel(B, H, W, Cin_p, Cout_p)
    c2 = lambda i: (0, 0)
    c3 = lambda i: (0, 0, 0)

    out = pl.pallas_call(
        kernel,
        out_shape=jax.ShapeDtypeStruct((Cout_p, B * HW2), f32),
        grid=(1,),                                   # whole batch in one step (1 TC on v5e/v6e)
        in_specs=[
            pl.BlockSpec((B, Cin_p, L), c3),         # x_flat
            pl.BlockSpec((Cin_p, B * HW2), c2),      # x_res (stride-2 samples, batch on lanes)
            pl.BlockSpec((Cout_p, 9 * Cin_p), c2),   # conv1 weights (im2col order, bf16)
            pl.BlockSpec((Cout_p, 9 * Cout_p), c2),  # conv2 weights (im2col order, bf16)
            pl.BlockSpec((Cout_p, Cin_p), c2),       # residual 1x1 weights (bf16)
            pl.BlockSpec((Cout_p, M), c2),           # bias map 1 (coords + b1), f32
            pl.BlockSpec((Cout_p, M), c2),           # bias map 2 (coords + b2), f32
            pl.BlockSpec((Cout_p, B * HW2), c2),     # residual bias map (tiled over batch)
            pl.BlockSpec((1, M), c2),                # column validity mask
            pl.BlockSpec((M, HW2), c2),              # block-structured pooling matrix (bf16)
        ],
        out_specs=pl.BlockSpec((Cout_p, B * HW2), c2),
        scratch_shapes=[
            pltpu.VMEM((Cout_p, L), bf16),           # zero-padded conv-2 input buffer
            pltpu.VMEM((9 * Cin_p, M), bf16),        # conv-1 im2col staging
            pltpu.VMEM((9 * Cout_p, M), bf16),       # conv-2 im2col staging
        ],
        compiler_params=pltpu.CompilerParams(dimension_semantics=("arbitrary",)),
    )(x_flat, x_res, prep["W1"], prep["W2"], prep["Wres"],
      prep["bias1"], prep["bias2"], resb_t, prep["mask"], prep["pool"])

    # (Cout_p, B*HW2) with batch-major lane blocks -> NCHW
    return jnp.transpose(out[:Cout].reshape(Cout, B, H2, W2), (1, 0, 2, 3))


def _reference(x_nchw, params):
    """Pure-JAX reference mirroring the PyTorch module (numerical sanity check)."""
    def add_coords(x):  # NCHW
        B, _, H, W = x.shape
        xx = jnp.broadcast_to((2.0 * jnp.arange(H, dtype=jnp.float32) / (H - 1) - 1.0)[:, None], (H, W))
        yy = jnp.broadcast_to((2.0 * jnp.arange(W, dtype=jnp.float32) / (W - 1) - 1.0)[None, :], (H, W))
        xx = jnp.broadcast_to(xx[None, None], (B, 1, H, W))
        yy = jnp.broadcast_to(yy[None, None], (B, 1, H, W))
        return jnp.concatenate([x, xx, yy], axis=1)

    def conv(x, w_kio, b, stride, pad, ksize):
        cin, cout = w_kio.shape[1], w_kio.shape[2]
        w = jnp.transpose(w_kio.reshape(ksize, ksize, cin, cout), (3, 2, 0, 1))   # OIHW
        y = jax.lax.conv_general_dilated(
            x, w, (stride, stride), ((pad, pad), (pad, pad)),
            dimension_numbers=("NCHW", "OIHW", "NCHW"))
        return y + b.reshape(1, -1, 1, 1)

    leaky = lambda v: jnp.where(v >= 0, v, 0.2 * v)
    res = conv(add_coords(x_nchw), params["wres"][None], params["bres"], 2, 0, 1)
    h = leaky(conv(add_coords(x_nchw), params["w1"], params["b1"], 1, 1, 3))
    h = leaky(conv(add_coords(h), params["w2"], params["b2"], 1, 1, 3))
    B, C, H, W = h.shape
    h = h.reshape(B, C, H // 2, 2, W // 2, 2).mean(axis=(3, 5))
    return h + res


if __name__ == "__main__":
    B, Cin, Cout, H, W = 2, 4, 8, 16, 16      # dim=4, dim_out=8
    key = jax.random.PRNGKey(0)
    ks = jax.random.split(key, 7)
    x = jax.random.normal(ks[0], (B, Cin, H, W), jnp.float32)
    # deterministic synthetic parameters (shapes follow the module's __init__)
    params = dict(
        w1=0.1 * jax.random.normal(ks[1], (9, Cin + 2, Cout), jnp.float32),    # CoordConv(dim, dim_out, 3, pad=1)
        b1=0.1 * jax.random.normal(ks[2], (1, Cout), jnp.float32),
        w2=0.1 * jax.random.normal(ks[3], (9, Cout + 2, Cout), jnp.float32),   # CoordConv(dim_out, dim_out, 3, pad=1)
        b2=0.1 * jax.random.normal(ks[4], (1, Cout), jnp.float32),
        wres=0.1 * jax.random.normal(ks[5], (Cin + 2, Cout), jnp.float32),     # CoordConv(dim, dim_out, 1, stride=2)
        bres=0.1 * jax.random.normal(ks[6], (1, Cout), jnp.float32),
    )

    prep = precompute_block_params(params, H, W)   # one-time parameter prep (hoisted)
    out = jax.block_until_ready(discriminator_block(x, prep))
    ref = jax.block_until_ready(_reference(x, params))
    assert out.shape == (B, Cout, H // 2, W // 2), out.shape
    err = float(jnp.max(jnp.abs(out - ref)))
    assert err < 5e-2, f"max abs err too large: {err}"
    print("KERNEL_OK")
</pallas_src>

<mosaic_0001>
module attributes {stable_mosaic.version = 11 : i64} {
  func.func @kernel(%arg0: i32, %arg1: memref<2x16x326xbf16, #tpu.memory_space<vmem>>, %arg2: memref<16x128xbf16, #tpu.memory_space<vmem>>, %arg3: memref<16x144xbf16, #tpu.memory_space<vmem>>, %arg4: memref<16x144xbf16, #tpu.memory_space<vmem>>, %arg5: memref<16x16xbf16, #tpu.memory_space<vmem>>, %arg6: memref<16x288xf32, #tpu.memory_space<vmem>>, %arg7: memref<16x288xf32, #tpu.memory_space<vmem>>, %arg8: memref<16x128xf32, #tpu.memory_space<vmem>>, %arg9: memref<1x288xf32, #tpu.memory_space<vmem>>, %arg10: memref<288x64xbf16, #tpu.memory_space<vmem>>, %arg11: memref<16x128xf32, #tpu.memory_space<vmem>>, %arg12: memref<16x326xbf16, #tpu.memory_space<vmem>>, %arg13: memref<144x288xbf16, #tpu.memory_space<vmem>>, %arg14: memref<144x288xbf16, #tpu.memory_space<vmem>>) attributes {dimension_semantics = [#tpu.dimension_semantics<arbitrary>], iteration_bounds = array<i64: 1>, scalar_prefetch = 0 : i64, scratch_operands = 3 : i64, tpu.core_type = #tpu.core_type<tc>, window_params = [{pipeline_mode = #tpu.pipeline_mode<synchronous>, transform_indices = @transform_0, window_bounds = array<i64: 2, 16, 326>}, {pipeline_mode = #tpu.pipeline_mode<synchronous>, transform_indices = @transform_1, window_bounds = array<i64: 16, 128>}, {pipeline_mode = #tpu.pipeline_mode<synchronous>, transform_indices = @transform_2, window_bounds = array<i64: 16, 144>}, {pipeline_mode = #tpu.pipeline_mode<synchronous>, transform_indices = @transform_3, window_bounds = array<i64: 16, 144>}, {pipeline_mode = #tpu.pipeline_mode<synchronous>, transform_indices = @transform_4, window_bounds = array<i64: 16, 16>}, {pipeline_mode = #tpu.pipeline_mode<synchronous>, transform_indices = @transform_5, window_bounds = array<i64: 16, 288>}, {pipeline_mode = #tpu.pipeline_mode<synchronous>, transform_indices = @transform_6, window_bounds = array<i64: 16, 288>}, {pipeline_mode = #tpu.pipeline_mode<synchronous>, transform_indices = @transform_7, window_bounds = array<i64: 16, 128>}, {pipeline_mode = #tpu.pipeline_mode<synchronous>, transform_indices = @transform_8, window_bounds = array<i64: 1, 288>}, {pipeline_mode = #tpu.pipeline_mode<synchronous>, transform_indices = @transform_9, window_bounds = array<i64: 288, 64>}, {pipeline_mode = #tpu.pipeline_mode<synchronous>, transform_indices = @transform_10, window_bounds = array<i64: 16, 128>}]} {
    %c0 = arith.constant 0 : index
    %c0_0 = arith.constant 0 : index
    %0 = vector.load %arg5[%c0, %c0_0] : memref<16x16xbf16, #tpu.memory_space<vmem>>, vector<16x16xbf16>
    %c0_1 = arith.constant 0 : index
    %c0_2 = arith.constant 0 : index
    %1 = vector.load %arg2[%c0_1, %c0_2] : memref<16x128xbf16, #tpu.memory_space<vmem>>, vector<16x128xbf16>
    %cst = arith.constant dense<0.000000e+00> : vector<16x128xf32>
    %2 = tpu.matmul %0, %1, %cst {dimension_numbers = #tpu.dot_dimension_numbers<[1], [0], [0], [1], [0, 0, 1, 1], [], []>} : vector<16x16xbf16>, vector<16x128xbf16>, vector<16x128xf32> -> vector<16x128xf32>
    %c0_3 = arith.constant 0 : index
    %c0_4 = arith.constant 0 : index
    %3 = vector.load %arg8[%c0_3, %c0_4] : memref<16x128xf32, #tpu.memory_space<vmem>>, vector<16x128xf32>
    %4 = arith.addf %2, %3 : vector<16x128xf32>
    %cst_5 = arith.constant 0.000000e+00 : bf16
    %5 = vector.broadcast %cst_5 : bf16 to vector<16x326xbf16>
    %c0_6 = arith.constant 0 : index
    %c0_7 = arith.constant 0 : index
    %6 = vector.load %arg12[%c0_6, %c0_7] : memref<16x326xbf16, #tpu.memory_space<vmem>>, vector<16x326xbf16>
    tpu.vector_store %arg12[%c0_6, %c0_7], %5 {strides = array<i32>} : memref<16x326xbf16, #tpu.memory_space<vmem>>, vector<16x326xbf16>,
    %c0_8 = arith.constant 0 : index
    %c0_9 = arith.constant 0 : index
    %c0_10 = arith.constant 0 : index
    %7 = vector.load %arg1[%c0_8, %c0_9, %c0_10] : memref<2x16x326xbf16, #tpu.memory_space<vmem>>, vector<1x16x288xbf16>
    %8 = vector.shape_cast %7 : vector<1x16x288xbf16> to vector<16x288xbf16>
    %c0_11 = arith.constant 0 : index
    %c0_12 = arith.constant 0 : index
    %9 = vector.load %arg13[%c0_11, %c0_12] : memref<144x288xbf16, #tpu.memory_space<vmem>>, vector<16x288xbf16>
    tpu.vector_store %arg13[%c0_11, %c0_12], %8 {strides = array<i32>} : memref<144x288xbf16, #tpu.memory_space<vmem>>, vector<16x288xbf16>,
    %c0_13 = arith.constant 0 : index
    %c0_14 = arith.constant 0 : index
    %c1 = arith.constant 1 : index
    %10 = vector.load %arg1[%c0_13, %c0_14, %c1] : memref<2x16x326xbf16, #tpu.memory_space<vmem>>, vector<1x16x288xbf16>
    %11 = vector.shape_cast %10 : vector<1x16x288xbf16> to vector<16x288xbf16>
    %c16 = arith.constant 16 : index
    %c0_15 = arith.constant 0 : index
    %12 = vector.load %arg13[%c16, %c0_15] : memref<144x288xbf16, #tpu.memory_space<vmem>>, vector<16x288xbf16>
    tpu.vector_store %arg13[%c16, %c0_15], %11 {strides = array<i32>} : memref<144x288xbf16, #tpu.memory_space<vmem>>, vector<16x288xbf16>,
    %c0_16 = arith.constant 0 : index
    %c0_17 = arith.constant 0 : index
    %c2 = arith.constant 2 : index
    %13 = vector.load %arg1[%c0_16, %c0_17, %c2] : memref<2x16x326xbf16, #tpu.memory_space<vmem>>, vector<1x16x288xbf16>
    %14 = vector.shape_cast %13 : vector<1x16x288xbf16> to vector<16x288xbf16>
    %c32 = arith.constant 32 : index
    %c0_18 = arith.constant 0 : index
    %15 = vector.load %arg13[%c32, %c0_18] : memref<144x288xbf16, #tpu.memory_space<vmem>>, vector<16x288xbf16>
    tpu.vector_store %arg13[%c32, %c0_18], %14 {strides = array<i32>} : memref<144x288xbf16, #tpu.memory_space<vmem>>, vector<16x288xbf16>,
    %c0_19 = arith.constant 0 : index
    %c0_20 = arith.constant 0 : index
    %c18 = arith.constant 18 : index
    %16 = vector.load %arg1[%c0_19, %c0_20, %c18] : memref<2x16x326xbf16, #tpu.memory_space<vmem>>, vector<1x16x288xbf16>
    %17 = vector.shape_cast %16 : vector<1x16x288xbf16> to vector<16x288xbf16>
    %c48 = arith.constant 48 : index
    %c0_21 = arith.constant 0 : index
    %18 = vector.load %arg13[%c48, %c0_21] : memref<144x288xbf16, #tpu.memory_space<vmem>>, vector<16x288xbf16>
    tpu.vector_store %arg13[%c48, %c0_21], %17 {strides = array<i32>} : memref<144x288xbf16, #tpu.memory_space<vmem>>, vector<16x288xbf16>,
    %c0_22 = arith.constant 0 : index
    %c0_23 = arith.constant 0 : index
    %c19 = arith.constant 19 : index
    %19 = vector.load %arg1[%c0_22, %c0_23, %c19] : memref<2x16x326xbf16, #tpu.memory_space<vmem>>, vector<1x16x288xbf16>
    %20 = vector.shape_cast %19 : vector<1x16x288xbf16> to vector<16x288xbf16>
    %c64 = arith.constant 64 : index
    %c0_24 = arith.constant 0 : index
    %21 = vector.load %arg13[%c64, %c0_24] : memref<144x288xbf16, #tpu.memory_space<vmem>>, vector<16x288xbf16>
    tpu.vector_store %arg13[%c64, %c0_24], %20 {strides = array<i32>} : memref<144x288xbf16, #tpu.memory_space<vmem>>, vector<16x288xbf16>,
    %c0_25 = arith.constant 0 : index
    %c0_26 = arith.constant 0 : index
    %c20 = arith.constant 20 : index
    %22 = vector.load %arg1[%c0_25, %c0_26, %c20] : memref<2x16x326xbf16, #tpu.memory_space<vmem>>, vector<1x16x288xbf16>
    %23 = vector.shape_cast %22 : vector<1x16x288xbf16> to vector<16x288xbf16>
    %c80 = arith.constant 80 : index
    %c0_27 = arith.constant 0 : index
    %24 = vector.load %arg13[%c80, %c0_27] : memref<144x288xbf16, #tpu.memory_space<vmem>>, vector<16x288xbf16>
    tpu.vector_store %arg13[%c80, %c0_27], %23 {strides = array<i32>} : memref<144x288xbf16, #tpu.memory_space<vmem>>, vector<16x288xbf16>,
    %c0_28 = arith.constant 0 : index
    %c0_29 = arith.constant 0 : index
    %c36 = arith.constant 36 : index
    %25 = vector.load %arg1[%c0_28, %c0_29, %c36] : memref<2x16x326xbf16, #tpu.memory_space<vmem>>, vector<1x16x288xbf16>
    %26 = vector.shape_cast %25 : vector<1x16x288xbf16> to vector<16x288xbf16>
    %c96 = arith.constant 96 : index
    %c0_30 = arith.constant 0 : index
    %27 = vector.load %arg13[%c96, %c0_30] : memref<144x288xbf16, #tpu.memory_space<vmem>>, vector<16x288xbf16>
    tpu.vector_store %arg13[%c96, %c0_30], %26 {strides = array<i32>} : memref<144x288xbf16, #tpu.memory_space<vmem>>, vector<16x288xbf16>,
    %c0_31 = arith.constant 0 : index
    %c0_32 = arith.constant 0 : index
    %c37 = arith.constant 37 : index
    %28 = vector.load %arg1[%c0_31, %c0_32, %c37] : memref<2x16x326xbf16, #tpu.memory_space<vmem>>, vector<1x16x288xbf16>
    %29 = vector.shape_cast %28 : vector<1x16x288xbf16> to vector<16x288xbf16>
    %c112 = arith.constant 112 : index
    %c0_33 = arith.constant 0 : index
    %30 = vector.load %arg13[%c112, %c0_33] : memref<144x288xbf16, #tpu.memory_space<vmem>>, vector<16x288xbf16>
    tpu.vector_store %arg13[%c112, %c0_33], %29 {strides = array<i32>} : memref<144x288xbf16, #tpu.memory_space<vmem>>, vector<16x288xbf16>,
    %c0_34 = arith.constant 0 : index
    %c0_35 = arith.constant 0 : index
    %c38 = arith.constant 38 : index
    %31 = vector.load %arg1[%c0_34, %c0_35, %c38] : memref<2x16x326xbf16, #tpu.memory_space<vmem>>, vector<1x16x288xbf16>
    %32 = vector.shape_cast %31 : vector<1x16x288xbf16> to vector<16x288xbf16>
    %c128 = arith.constant 128 : index
    %c0_36 = arith.constant 0 : index
    %33 = vector.load %arg13[%c128, %c0_36] : memref<144x288xbf16, #tpu.memory_space<vmem>>, vector<16x288xbf16>
    tpu.vector_store %arg13[%c128, %c0_36], %32 {strides = array<i32>} : memref<144x288xbf16, #tpu.memory_space<vmem>>, vector<16x288xbf16>,
    %c0_37 = arith.constant 0 : index
    %c0_38 = arith.constant 0 : index
    %34 = vector.load %arg3[%c0_37, %c0_38] : memref<16x144xbf16, #tpu.memory_space<vmem>>, vector<16x144xbf16>
    %c0_39 = arith.constant 0 : index
    %c0_40 = arith.constant 0 : index
    %35 = vector.load %arg13[%c0_39, %c0_40] : memref<144x288xbf16, #tpu.memory_space<vmem>>, vector<144x288xbf16>
    %cst_41 = arith.constant dense<0.000000e+00> : vector<16x288xf32>
    %36 = tpu.matmul %34, %35, %cst_41 {dimension_numbers = #tpu.dot_dimension_numbers<[1], [0], [0], [1], [0, 0, 1, 1], [], []>} : vector<16x144xbf16>, vector<144x288xbf16>, vector<16x288xf32> -> vector<16x288xf32>
    %c0_42 = arith.constant 0 : index
    %c0_43 = arith.constant 0 : index
    %37 = vector.load %arg6[%c0_42, %c0_43] : memref<16x288xf32, #tpu.memory_space<vmem>>, vector<16x288xf32>
    %38 = arith.addf %36, %37 : vector<16x288xf32>
    %cst_44 = arith.constant 0.000000e+00 : f32
    %39 = vector.broadcast %cst_44 : f32 to vector<16x288xf32>
    %40 = arith.cmpf oge, %38, %39 : vector<16x288xf32>
    %cst_45 = arith.constant 2.000000e-01 : f32
    %41 = vector.broadcast %cst_45 : f32 to vector<16x288xf32>
    %42 = arith.mulf %41, %38 : vector<16x288xf32>
    %43 = arith.select %40, %38, %42 : vector<16x288xi1>, vector<16x288xf32>
    %c0_46 = arith.constant 0 : index
    %c0_47 = arith.constant 0 : index
    %44 = vector.load %arg9[%c0_46, %c0_47] : memref<1x288xf32, #tpu.memory_space<vmem>>, vector<1x288xf32>
    %45 = vector.broadcast %44 : vector<1x288xf32> to vector<16x288xf32>
    %46 = arith.mulf %43, %45 : vector<16x288xf32>
    %47 = arith.truncf %46 : vector<16x288xf32> to vector<16x288xbf16>
    %c0_48 = arith.constant 0 : index
    %c19_49 = arith.constant 19 : index
    %48 = vector.load %arg12[%c0_48, %c19_49] : memref<16x326xbf16, #tpu.memory_space<vmem>>, vector<16x288xbf16>
    tpu.vector_store %arg12[%c0_48, %c19_49], %47 {strides = array<i32>} : memref<16x326xbf16, #tpu.memory_space<vmem>>, vector<16x288xbf16>,
    %c0_50 = arith.constant 0 : index
    %c0_51 = arith.constant 0 : index
    %49 = vector.load %arg12[%c0_50, %c0_51] : memref<16x326xbf16, #tpu.memory_space<vmem>>, vector<16x288xbf16>
    %c0_52 = arith.constant 0 : index
    %c0_53 = arith.constant 0 : index
    %50 = vector.load %arg14[%c0_52, %c0_53] : memref<144x288xbf16, #tpu.memory_space<vmem>>, vector<16x288xbf16>
    tpu.vector_store %arg14[%c0_52, %c0_53], %49 {strides = array<i32>} : memref<144x288xbf16, #tpu.memory_space<vmem>>, vector<16x288xbf16>,
    %c0_54 = arith.constant 0 : index
    %c1_55 = arith.constant 1 : index
    %51 = vector.load %arg12[%c0_54, %c1_55] : memref<16x326xbf16, #tpu.memory_space<vmem>>, vector<16x288xbf16>
    %c16_56 = arith.constant 16 : index
    %c0_57 = arith.constant 0 : index
    %52 = vector.load %arg14[%c16_56, %c0_57] : memref<144x288xbf16, #tpu.memory_space<vmem>>, vector<16x288xbf16>
    tpu.vector_store %arg14[%c16_56, %c0_57], %51 {strides = array<i32>} : memref<144x288xbf16, #tpu.memory_space<vmem>>, vector<16x288xbf16>,
    %c0_58 = arith.constant 0 : index
    %c2_59 = arith.constant 2 : index
    %53 = vector.load %arg12[%c0_58, %c2_59] : memref<16x326xbf16, #tpu.memory_space<vmem>>, vector<16x288xbf16>
    %c32_60 = arith.constant 32 : index
    %c0_61 = arith.constant 0 : index
    %54 = vector.load %arg14[%c32_60, %c0_61] : memref<144x288xbf16, #tpu.memory_space<vmem>>, vector<16x288xbf16>
    tpu.vector_store %arg14[%c32_60, %c0_61], %53 {strides = array<i32>} : memref<144x288xbf16, #tpu.memory_space<vmem>>, vector<16x288xbf16>,
    %c0_62 = arith.constant 0 : index
    %c18_63 = arith.constant 18 : index
    %55 = vector.load %arg12[%c0_62, %c18_63] : memref<16x326xbf16, #tpu.memory_space<vmem>>, vector<16x288xbf16>
    %c48_64 = arith.constant 48 : index
    %c0_65 = arith.constant 0 : index
    %56 = vector.load %arg14[%c48_64, %c0_65] : memref<144x288xbf16, #tpu.memory_space<vmem>>, vector<16x288xbf16>
    tpu.vector_store %arg14[%c48_64, %c0_65], %55 {strides = array<i32>} : memref<144x288xbf16, #tpu.memory_space<vmem>>, vector<16x288xbf16>,
    %c0_66 = arith.constant 0 : index
    %c19_67 = arith.constant 19 : index
    %57 = vector.load %arg12[%c0_66, %c19_67] : memref<16x326xbf16, #tpu.memory_space<vmem>>, vector<16x288xbf16>
    %c64_68 = arith.constant 64 : index
    %c0_69 = arith.constant 0 : index
    %58 = vector.load %arg14[%c64_68, %c0_69] : memref<144x288xbf16, #tpu.memory_space<vmem>>, vector<16x288xbf16>
    tpu.vector_store %arg14[%c64_68, %c0_69], %57 {strides = array<i32>} : memref<144x288xbf16, #tpu.memory_space<vmem>>, vector<16x288xbf16>,
    %c0_70 = arith.constant 0 : index
    %c20_71 = arith.constant 20 : index
    %59 = vector.load %arg12[%c0_70, %c20_71] : memref<16x326xbf16, #tpu.memory_space<vmem>>, vector<16x288xbf16>
    %c80_72 = arith.constant 80 : index
    %c0_73 = arith.constant 0 : index
    %60 = vector.load %arg14[%c80_72, %c0_73] : memref<144x288xbf16, #tpu.memory_space<vmem>>, vector<16x288xbf16>
    tpu.vector_store %arg14[%c80_72, %c0_73], %59 {strides = array<i32>} : memref<144x288xbf16, #tpu.memory_space<vmem>>, vector<16x288xbf16>,
    %c0_74 = arith.constant 0 : index
    %c36_75 = arith.constant 36 : index
    %61 = vector.load %arg12[%c0_74, %c36_75] : memref<16x326xbf16, #tpu.memory_space<vmem>>, vector<16x288xbf16>
    %c96_76 = arith.constant 96 : index
    %c0_77 = arith.constant 0 : index
    %62 = vector.load %arg14[%c96_76, %c0_77] : memref<144x288xbf16, #tpu.memory_space<vmem>>, vector<16x288xbf16>
    tpu.vector_store %arg14[%c96_76, %c0_77], %61 {strides = array<i32>} : memref<144x288xbf16, #tpu.memory_space<vmem>>, vector<16x288xbf16>,
    %c0_78 = arith.constant 0 : index
    %c37_79 = arith.constant 37 : index
    %63 = vector.load %arg12[%c0_78, %c37_79] : memref<16x326xbf16, #tpu.memory_space<vmem>>, vector<16x288xbf16>
    %c112_80 = arith.constant 112 : index
    %c0_81 = arith.constant 0 : index
    %64 = vector.load %arg14[%c112_80, %c0_81] : memref<144x288xbf16, #tpu.memory_space<vmem>>, vector<16x288xbf16>
    tpu.vector_store %arg14[%c112_80, %c0_81], %63 {strides = array<i32>} : memref<144x288xbf16, #tpu.memory_space<vmem>>, vector<16x288xbf16>,
    %c0_82 = arith.constant 0 : index
    %c38_83 = arith.constant 38 : index
    %65 = vector.load %arg12[%c0_82, %c38_83] : memref<16x326xbf16, #tpu.memory_space<vmem>>, vector<16x288xbf16>
    %c128_84 = arith.constant 128 : index
    %c0_85 = arith.constant 0 : index
    %66 = vector.load %arg14[%c128_84, %c0_85] : memref<144x288xbf16, #tpu.memory_space<vmem>>, vector<16x288xbf16>
    tpu.vector_store %arg14[%c128_84, %c0_85], %65 {strides = array<i32>} : memref<144x288xbf16, #tpu.memory_space<vmem>>, vector<16x288xbf16>,
    %c0_86 = arith.constant 0 : index
    %c0_87 = arith.constant 0 : index
    %67 = vector.load %arg4[%c0_86, %c0_87] : memref<16x144xbf16, #tpu.memory_space<vmem>>, vector<16x144xbf16>
    %c0_88 = arith.constant 0 : index
    %c0_89 = arith.constant 0 : index
    %68 = vector.load %arg14[%c0_88, %c0_89] : memref<144x288xbf16, #tpu.memory_space<vmem>>, vector<144x288xbf16>
    %cst_90 = arith.constant dense<0.000000e+00> : vector<16x288xf32>
    %69 = tpu.matmul %67, %68, %cst_90 {dimension_numbers = #tpu.dot_dimension_numbers<[1], [0], [0], [1], [0, 0, 1, 1], [], []>} : vector<16x144xbf16>, vector<144x288xbf16>, vector<16x288xf32> -> vector<16x288xf32>
    %c0_91 = arith.constant 0 : index
    %c0_92 = arith.constant 0 : index
    %70 = vector.load %arg7[%c0_91, %c0_92] : memref<16x288xf32, #tpu.memory_space<vmem>>, vector<16x288xf32>
    %71 = arith.addf %69, %70 : vector<16x288xf32>
    %cst_93 = arith.constant 0.000000e+00 : f32
    %72 = vector.broadcast %cst_93 : f32 to vector<16x288xf32>
    %73 = arith.cmpf oge, %71, %72 : vector<16x288xf32>
    %cst_94 = arith.constant 2.000000e-01 : f32
    %74 = vector.broadcast %cst_94 : f32 to vector<16x288xf32>
    %75 = arith.mulf %74, %71 : vector<16x288xf32>
    %76 = arith.select %73, %71, %75 : vector<16x288xi1>, vector<16x288xf32>
    %77 = arith.truncf %76 : vector<16x288xf32> to vector<16x288xbf16>
    %c0_95 = arith.constant 0 : index
    %c0_96 = arith.constant 0 : index
    %78 = vector.load %arg10[%c0_95, %c0_96] : memref<288x64xbf16, #tpu.memory_space<vmem>>, vector<288x64xbf16>
    %cst_97 = arith.constant dense<0.000000e+00> : vector<16x64xf32>
    %79 = tpu.matmul %77, %78, %cst_97 {dimension_numbers = #tpu.dot_dimension_numbers<[1], [0], [0], [1], [0, 0, 1, 1], [], []>} : vector<16x288xbf16>, vector<288x64xbf16>, vector<16x64xf32> -> vector<16x64xf32>
    %c1_98 = arith.constant 1 : index
    %c0_99 = arith.constant 0 : index
    %c0_100 = arith.constant 0 : index
    %80 = vector.load %arg1[%c1_98, %c0_99, %c0_100] : memref<2x16x326xbf16, #tpu.memory_space<vmem>>, vector<1x16x288xbf16>
    %81 = vector.shape_cast %80 : vector<1x16x288xbf16> to vector<16x288xbf16>
    %c0_101 = arith.constant 0 : index
    %c0_102 = arith.constant 0 : index
    %82 = vector.load %arg13[%c0_101, %c0_102] : memref<144x288xbf16, #tpu.memory_space<vmem>>, vector<16x288xbf16>
    tpu.vector_store %arg13[%c0_101, %c0_102], %81 {strides = array<i32>} : memref<144x288xbf16, #tpu.memory_space<vmem>>, vector<16x288xbf16>,
    %c1_103 = arith.constant 1 : index
    %c0_104 = arith.constant 0 : index
    %c1_105 = arith.constant 1 : index
    %83 = vector.load %arg1[%c1_103, %c0_104, %c1_105] : memref<2x16x326xbf16, #tpu.memory_space<vmem>>, vector<1x16x288xbf16>
    %84 = vector.shape_cast %83 : vector<1x16x288xbf16> to vector<16x288xbf16>
    %c16_106 = arith.constant 16 : index
    %c0_107 = arith.constant 0 : index
    %85 = vector.load %arg13[%c16_106, %c0_107] : memref<144x288xbf16, #tpu.memory_space<vmem>>, vector<16x288xbf16>
    tpu.vector_store %arg13[%c16_106, %c0_107], %84 {strides = array<i32>} : memref<144x288xbf16, #tpu.memory_space<vmem>>, vector<16x288xbf16>,
    %c1_108 = arith.constant 1 : index
    %c0_109 = arith.constant 0 : index
    %c2_110 = arith.constant 2 : index
    %86 = vector.load %arg1[%c1_108, %c0_109, %c2_110] : memref<2x16x326xbf16, #tpu.memory_space<vmem>>, vector<1x16x288xbf16>
    %87 = vector.shape_cast %86 : vector<1x16x288xbf16> to vector<16x288xbf16>
    %c32_111 = arith.constant 32 : index
    %c0_112 = arith.constant 0 : index
    %88 = vector.load %arg13[%c32_111, %c0_112] : memref<144x288xbf16, #tpu.memory_space<vmem>>, vector<16x288xbf16>
    tpu.vector_store %arg13[%c32_111, %c0_112], %87 {strides = array<i32>} : memref<144x288xbf16, #tpu.memory_space<vmem>>, vector<16x288xbf16>,
    %c1_113 = arith.constant 1 : index
    %c0_114 = arith.constant 0 : index
    %c18_115 = arith.constant 18 : index
    %89 = vector.load %arg1[%c1_113, %c0_114, %c18_115] : memref<2x16x326xbf16, #tpu.memory_space<vmem>>, vector<1x16x288xbf16>
    %90 = vector.shape_cast %89 : vector<1x16x288xbf16> to vector<16x288xbf16>
    %c48_116 = arith.constant 48 : index
    %c0_117 = arith.constant 0 : index
    %91 = vector.load %arg13[%c48_116, %c0_117] : memref<144x288xbf16, #tpu.memory_space<vmem>>, vector<16x288xbf16>
    tpu.vector_store %arg13[%c48_116, %c0_117], %90 {strides = array<i32>} : memref<144x288xbf16, #tpu.memory_space<vmem>>, vector<16x288xbf16>,
    %c1_118 = arith.constant 1 : index
    %c0_119 = arith.constant 0 : index
    %c19_120 = arith.constant 19 : index
    %92 = vector.load %arg1[%c1_118, %c0_119, %c19_120] : memref<2x16x326xbf16, #tpu.memory_space<vmem>>, vector<1x16x288xbf16>
    %93 = vector.shape_cast %92 : vector<1x16x288xbf16> to vector<16x288xbf16>
    %c64_121 = arith.constant 64 : index
    %c0_122 = arith.constant 0 : index
    %94 = vector.load %arg13[%c64_121, %c0_122] : memref<144x288xbf16, #tpu.memory_space<vmem>>, vector<16x288xbf16>
    tpu.vector_store %arg13[%c64_121, %c0_122], %93 {strides = array<i32>} : memref<144x288xbf16, #tpu.memory_space<vmem>>, vector<16x288xbf16>,
    %c1_123 = arith.constant 1 : index
    %c0_124 = arith.constant 0 : index
    %c20_125 = arith.constant 20 : index
    %95 = vector.load %arg1[%c1_123, %c0_124, %c20_125] : memref<2x16x326xbf16, #tpu.memory_space<vmem>>, vector<1x16x288xbf16>
    %96 = vector.shape_cast %95 : vector<1x16x288xbf16> to vector<16x288xbf16>
    %c80_126 = arith.constant 80 : index
    %c0_127 = arith.constant 0 : index
    %97 = vector.load %arg13[%c80_126, %c0_127] : memref<144x288xbf16, #tpu.memory_space<vmem>>, vector<16x288xbf16>
    tpu.vector_store %arg13[%c80_126, %c0_127], %96 {strides = array<i32>} : memref<144x288xbf16, #tpu.memory_space<vmem>>, vector<16x288xbf16>,
    %c1_128 = arith.constant 1 : index
    %c0_129 = arith.constant 0 : index
    %c36_130 = arith.constant 36 : index
    %98 = vector.load %arg1[%c1_128, %c0_129, %c36_130] : memref<2x16x326xbf16, #tpu.memory_space<vmem>>, vector<1x16x288xbf16>
    %99 = vector.shape_cast %98 : vector<1x16x288xbf16> to vector<16x288xbf16>
    %c96_131 = arith.constant 96 : index
    %c0_132 = arith.constant 0 : index
    %100 = vector.load %arg13[%c96_131, %c0_132] : memref<144x288xbf16, #tpu.memory_space<vmem>>, vector<16x288xbf16>
    tpu.vector_store %arg13[%c96_131, %c0_132], %99 {strides = array<i32>} : memref<144x288xbf16, #tpu.memory_space<vmem>>, vector<16x288xbf16>,
    %c1_133 = arith.constant 1 : index
    %c0_134 = arith.constant 0 : index
    %c37_135 = arith.constant 37 : index
    %101 = vector.load %arg1[%c1_133, %c0_134, %c37_135] : memref<2x16x326xbf16, #tpu.memory_space<vmem>>, vector<1x16x288xbf16>
    %102 = vector.shape_cast %101 : vector<1x16x288xbf16> to vector<16x288xbf16>
    %c112_136 = arith.constant 112 : index
    %c0_137 = arith.constant 0 : index
    %103 = vector.load %arg13[%c112_136, %c0_137] : memref<144x288xbf16, #tpu.memory_space<vmem>>, vector<16x288xbf16>
    tpu.vector_store %arg13[%c112_136, %c0_137], %102 {strides = array<i32>} : memref<144x288xbf16, #tpu.memory_space<vmem>>, vector<16x288xbf16>,
    %c1_138 = arith.constant 1 : index
    %c0_139 = arith.constant 0 : index
    %c38_140 = arith.constant 38 : index
    %104 = vector.load %arg1[%c1_138, %c0_139, %c38_140] : memref<2x16x326xbf16, #tpu.memory_space<vmem>>, vector<1x16x288xbf16>
    %105 = vector.shape_cast %104 : vector<1x16x288xbf16> to vector<16x288xbf16>
    %c128_141 = arith.constant 128 : index
    %c0_142 = arith.constant 0 : index
    %106 = vector.load %arg13[%c128_141, %c0_142] : memref<144x288xbf16, #tpu.memory_space<vmem>>, vector<16x288xbf16>
    tpu.vector_store %arg13[%c128_141, %c0_142], %105 {strides = array<i32>} : memref<144x288xbf16, #tpu.memory_space<vmem>>, vector<16x288xbf16>,
    %c0_143 = arith.constant 0 : index
    %c0_144 = arith.constant 0 : index
    %107 = vector.load %arg3[%c0_143, %c0_144] : memref<16x144xbf16, #tpu.memory_space<vmem>>, vector<16x144xbf16>
    %c0_145 = arith.constant 0 : index
    %c0_146 = arith.constant 0 : index
    %108 = vector.load %arg13[%c0_145, %c0_146] : memref<144x288xbf16, #tpu.memory_space<vmem>>, vector<144x288xbf16>
    %cst_147 = arith.constant dense<0.000000e+00> : vector<16x288xf32>
    %109 = tpu.matmul %107, %108, %cst_147 {dimension_numbers = #tpu.dot_dimension_numbers<[1], [0], [0], [1], [0, 0, 1, 1], [], []>} : vector<16x144xbf16>, vector<144x288xbf16>, vector<16x288xf32> -> vector<16x288xf32>
    %c0_148 = arith.constant 0 : index
    %c0_149 = arith.constant 0 : index
    %110 = vector.load %arg6[%c0_148, %c0_149] : memref<16x288xf32, #tpu.memory_space<vmem>>, vector<16x288xf32>
    %111 = arith.addf %109, %110 : vector<16x288xf32>
    %cst_150 = arith.constant 0.000000e+00 : f32
    %112 = vector.broadcast %cst_150 : f32 to vector<16x288xf32>
    %113 = arith.cmpf oge, %111, %112 : vector<16x288xf32>
    %cst_151 = arith.constant 2.000000e-01 : f32
    %114 = vector.broadcast %cst_151 : f32 to vector<16x288xf32>
    %115 = arith.mulf %114, %111 : vector<16x288xf32>
    %116 = arith.select %113, %111, %115 : vector<16x288xi1>, vector<16x288xf32>
    %c0_152 = arith.constant 0 : index
    %c0_153 = arith.constant 0 : index
    %117 = vector.load %arg9[%c0_152, %c0_153] : memref<1x288xf32, #tpu.memory_space<vmem>>, vector<1x288xf32>
    %118 = vector.broadcast %117 : vector<1x288xf32> to vector<16x288xf32>
    %119 = arith.mulf %116, %118 : vector<16x288xf32>
    %120 = arith.truncf %119 : vector<16x288xf32> to vector<16x288xbf16>
    %c0_154 = arith.constant 0 : index
    %c19_155 = arith.constant 19 : index
    %121 = vector.load %arg12[%c0_154, %c19_155] : memref<16x326xbf16, #tpu.memory_space<vmem>>, vector<16x288xbf16>
    tpu.vector_store %arg12[%c0_154, %c19_155], %120 {strides = array<i32>} : memref<16x326xbf16, #tpu.memory_space<vmem>>, vector<16x288xbf16>,
    %c0_156 = arith.constant 0 : index
    %c0_157 = arith.constant 0 : index
    %122 = vector.load %arg12[%c0_156, %c0_157] : memref<16x326xbf16, #tpu.memory_space<vmem>>, vector<16x288xbf16>
    %c0_158 = arith.constant 0 : index
    %c0_159 = arith.constant 0 : index
    %123 = vector.load %arg14[%c0_158, %c0_159] : memref<144x288xbf16, #tpu.memory_space<vmem>>, vector<16x288xbf16>
    tpu.vector_store %arg14[%c0_158, %c0_159], %122 {strides = array<i32>} : memref<144x288xbf16, #tpu.memory_space<vmem>>, vector<16x288xbf16>,
    %c0_160 = arith.constant 0 : index
    %c1_161 = arith.constant 1 : index
    %124 = vector.load %arg12[%c0_160, %c1_161] : memref<16x326xbf16, #tpu.memory_space<vmem>>, vector<16x288xbf16>
    %c16_162 = arith.constant 16 : index
    %c0_163 = arith.constant 0 : index
    %125 = vector.load %arg14[%c16_162, %c0_163] : memref<144x288xbf16, #tpu.memory_space<vmem>>, vector<16x288xbf16>
    tpu.vector_store %arg14[%c16_162, %c0_163], %124 {strides = array<i32>} : memref<144x288xbf16, #tpu.memory_space<vmem>>, vector<16x288xbf16>,
    %c0_164 = arith.constant 0 : index
    %c2_165 = arith.constant 2 : index
    %126 = vector.load %arg12[%c0_164, %c2_165] : memref<16x326xbf16, #tpu.memory_space<vmem>>, vector<16x288xbf16>
    %c32_166 = arith.constant 32 : index
    %c0_167 = arith.constant 0 : index
    %127 = vector.load %arg14[%c32_166, %c0_167] : memref<144x288xbf16, #tpu.memory_space<vmem>>, vector<16x288xbf16>
    tpu.vector_store %arg14[%c32_166, %c0_167], %126 {strides = array<i32>} : memref<144x288xbf16, #tpu.memory_space<vmem>>, vector<16x288xbf16>,
    %c0_168 = arith.constant 0 : index
    %c18_169 = arith.constant 18 : index
    %128 = vector.load %arg12[%c0_168, %c18_169] : memref<16x326xbf16, #tpu.memory_space<vmem>>, vector<16x288xbf16>
    %c48_170 = arith.constant 48 : index
    %c0_171 = arith.constant 0 : index
    %129 = vector.load %arg14[%c48_170, %c0_171] : memref<144x288xbf16, #tpu.memory_space<vmem>>, vector<16x288xbf16>
    tpu.vector_store %arg14[%c48_170, %c0_171], %128 {strides = array<i32>} : memref<144x288xbf16, #tpu.memory_space<vmem>>, vector<16x288xbf16>,
    %c0_172 = arith.constant 0 : index
    %c19_173 = arith.constant 19 : index
    %130 = vector.load %arg12[%c0_172, %c19_173] : memref<16x326xbf16, #tpu.memory_space<vmem>>, vector<16x288xbf16>
    %c64_174 = arith.constant 64 : index
    %c0_175 = arith.constant 0 : index
    %131 = vector.load %arg14[%c64_174, %c0_175] : memref<144x288xbf16, #tpu.memory_space<vmem>>, vector<16x288xbf16>
    tpu.vector_store %arg14[%c64_174, %c0_175], %130 {strides = array<i32>} : memref<144x288xbf16, #tpu.memory_space<vmem>>, vector<16x288xbf16>,
    %c0_176 = arith.constant 0 : index
    %c20_177 = arith.constant 20 : index
    %132 = vector.load %arg12[%c0_176, %c20_177] : memref<16x326xbf16, #tpu.memory_space<vmem>>, vector<16x288xbf16>
    %c80_178 = arith.constant 80 : index
    %c0_179 = arith.constant 0 : index
    %133 = vector.load %arg14[%c80_178, %c0_179] : memref<144x288xbf16, #tpu.memory_space<vmem>>, vector<16x288xbf16>
    tpu.vector_store %arg14[%c80_178, %c0_179], %132 {strides = array<i32>} : memref<144x288xbf16, #tpu.memory_space<vmem>>, vector<16x288xbf16>,
    %c0_180 = arith.constant 0 : index
    %c36_181 = arith.constant 36 : index
    %134 = vector.load %arg12[%c0_180, %c36_181] : memref<16x326xbf16, #tpu.memory_space<vmem>>, vector<16x288xbf16>
    %c96_182 = arith.constant 96 : index
    %c0_183 = arith.constant 0 : index
    %135 = vector.load %arg14[%c96_182, %c0_183] : memref<144x288xbf16, #tpu.memory_space<vmem>>, vector<16x288xbf16>
    tpu.vector_store %arg14[%c96_182, %c0_183], %134 {strides = array<i32>} : memref<144x288xbf16, #tpu.memory_space<vmem>>, vector<16x288xbf16>,
    %c0_184 = arith.constant 0 : index
    %c37_185 = arith.constant 37 : index
    %136 = vector.load %arg12[%c0_184, %c37_185] : memref<16x326xbf16, #tpu.memory_space<vmem>>, vector<16x288xbf16>
    %c112_186 = arith.constant 112 : index
    %c0_187 = arith.constant 0 : index
    %137 = vector.load %arg14[%c112_186, %c0_187] : memref<144x288xbf16, #tpu.memory_space<vmem>>, vector<16x288xbf16>
    tpu.vector_store %arg14[%c112_186, %c0_187], %136 {strides = array<i32>} : memref<144x288xbf16, #tpu.memory_space<vmem>>, vector<16x288xbf16>,
    %c0_188 = arith.constant 0 : index
    %c38_189 = arith.constant 38 : index
    %138 = vector.load %arg12[%c0_188, %c38_189] : memref<16x326xbf16, #tpu.memory_space<vmem>>, vector<16x288xbf16>
    %c128_190 = arith.constant 128 : index
    %c0_191 = arith.constant 0 : index
    %139 = vector.load %arg14[%c128_190, %c0_191] : memref<144x288xbf16, #tpu.memory_space<vmem>>, vector<16x288xbf16>
    tpu.vector_store %arg14[%c128_190, %c0_191], %138 {strides = array<i32>} : memref<144x288xbf16, #tpu.memory_space<vmem>>, vector<16x288xbf16>,
    %c0_192 = arith.constant 0 : index
    %c0_193 = arith.constant 0 : index
    %140 = vector.load %arg4[%c0_192, %c0_193] : memref<16x144xbf16, #tpu.memory_space<vmem>>, vector<16x144xbf16>
    %c0_194 = arith.constant 0 : index
    %c0_195 = arith.constant 0 : index
    %141 = vector.load %arg14[%c0_194, %c0_195] : memref<144x288xbf16, #tpu.memory_space<vmem>>, vector<144x288xbf16>
    %cst_196 = arith.constant dense<0.000000e+00> : vector<16x288xf32>
    %142 = tpu.matmul %140, %141, %cst_196 {dimension_numbers = #tpu.dot_dimension_numbers<[1], [0], [0], [1], [0, 0, 1, 1], [], []>} : vector<16x144xbf16>, vector<144x288xbf16>, vector<16x288xf32> -> vector<16x288xf32>
    %c0_197 = arith.constant 0 : index
    %c0_198 = arith.constant 0 : index
    %143 = vector.load %arg7[%c0_197, %c0_198] : memref<16x288xf32, #tpu.memory_space<vmem>>, vector<16x288xf32>
    %144 = arith.addf %142, %143 : vector<16x288xf32>
    %cst_199 = arith.constant 0.000000e+00 : f32
    %145 = vector.broadcast %cst_199 : f32 to vector<16x288xf32>
    %146 = arith.cmpf oge, %144, %145 : vector<16x288xf32>
    %cst_200 = arith.constant 2.000000e-01 : f32
    %147 = vector.broadcast %cst_200 : f32 to vector<16x288xf32>
    %148 = arith.mulf %147, %144 : vector<16x288xf32>
    %149 = arith.select %146, %144, %148 : vector<16x288xi1>, vector<16x288xf32>
    %150 = arith.truncf %149 : vector<16x288xf32> to vector<16x288xbf16>
    %c0_201 = arith.constant 0 : index
    %c0_202 = arith.constant 0 : index
    %151 = vector.load %arg10[%c0_201, %c0_202] : memref<288x64xbf16, #tpu.memory_space<vmem>>, vector<288x64xbf16>
    %cst_203 = arith.constant dense<0.000000e+00> : vector<16x64xf32>
    %152 = tpu.matmul %150, %151, %cst_203 {dimension_numbers = #tpu.dot_dimension_numbers<[1], [0], [0], [1], [0, 0, 1, 1], [], []>} : vector<16x288xbf16>, vector<288x64xbf16>, vector<16x64xf32> -> vector<16x64xf32>
    %153 = tpu.concatenate %79, %152 in 1 : vector<16x64xf32>, vector<16x64xf32> -> vector<16x128xf32>
    %154 = arith.addf %153, %4 : vector<16x128xf32>
    %c0_204 = arith.constant 0 : index
    %c0_205 = arith.constant 0 : index
    %155 = vector.load %arg11[%c0_204, %c0_205] : memref<16x128xf32, #tpu.memory_space<vmem>>, vector<16x128xf32>
    tpu.vector_store %arg11[%c0_204, %c0_205], %154 {strides = array<i32>} : memref<16x128xf32, #tpu.memory_space<vmem>>, vector<16x128xf32>,
    return
  }
  func.func @transform_0(%arg0: i32) -> (i32, i32, i32) {
    %c0_i32 = arith.constant 0 : i32
    %c0_i32_0 = arith.constant 0 : i32
    %c0_i32_1 = arith.constant 0 : i32
    %c0_i32_2 = arith.constant 0 : i32
    return %c0_i32, %c0_i32_0, %c0_i32_1 : i32, i32, i32
  }
  func.func @transform_1(%arg0: i32) -> (i32, i32) {
    %c0_i32 = arith.constant 0 : i32
    %c0_i32_0 = arith.constant 0 : i32
    %c0_i32_1 = arith.constant 0 : i32
    return %c0_i32, %c0_i32_0 : i32, i32
  }
  func.func @transform_2(%arg0: i32) -> (i32, i32) {
    %c0_i32 = arith.constant 0 : i32
    %c0_i32_0 = arith.constant 0 : i32
    %c0_i32_1 = arith.constant 0 : i32
    return %c0_i32, %c0_i32_0 : i32, i32
  }
  func.func @transform_3(%arg0: i32) -> (i32, i32) {
    %c0_i32 = arith.constant 0 : i32
    %c0_i32_0 = arith.constant 0 : i32
    %c0_i32_1 = arith.constant 0 : i32
    return %c0_i32, %c0_i32_0 : i32, i32
  }
  func.func @transform_4(%arg0: i32) -> (i32, i32) {
    %c0_i32 = arith.constant 0 : i32
    %c0_i32_0 = arith.constant 0 : i32
    %c0_i32_1 = arith.constant 0 : i32
    return %c0_i32, %c0_i32_0 : i32, i32
  }
  func.func @transform_5(%arg0: i32) -> (i32, i32) {
    %c0_i32 = arith.constant 0 : i32
    %c0_i32_0 = arith.constant 0 : i32
    %c0_i32_1 = arith.constant 0 : i32
    return %c0_i32, %c0_i32_0 : i32, i32
  }
  func.func @transform_6(%arg0: i32) -> (i32, i32) {
    %c0_i32 = arith.constant 0 : i32
    %c0_i32_0 = arith.constant 0 : i32
    %c0_i32_1 = arith.constant 0 : i32
    return %c0_i32, %c0_i32_0 : i32, i32
  }
  func.func @transform_7(%arg0: i32) -> (i32, i32) {
    %c0_i32 = arith.constant 0 : i32
    %c0_i32_0 = arith.constant 0 : i32
    %c0_i32_1 = arith.constant 0 : i32
    return %c0_i32, %c0_i32_0 : i32, i32
  }
  func.func @transform_8(%arg0: i32) -> (i32, i32) {
    %c0_i32 = arith.constant 0 : i32
    %c0_i32_0 = arith.constant 0 : i32
    %c0_i32_1 = arith.constant 0 : i32
    return %c0_i32, %c0_i32_0 : i32, i32
  }
  func.func @transform_9(%arg0: i32) -> (i32, i32) {
    %c0_i32 = arith.constant 0 : i32
    %c0_i32_0 = arith.constant 0 : i32
    %c0_i32_1 = arith.constant 0 : i32
    return %c0_i32, %c0_i32_0 : i32, i32
  }
  func.func @transform_10(%arg0: i32) -> (i32, i32) {
    %c0_i32 = arith.constant 0 : i32
    %c0_i32_0 = arith.constant 0 : i32
    %c0_i32_1 = arith.constant 0 : i32
    return %c0_i32, %c0_i32_0 : i32, i32
  }
}

</mosaic_0001>

<bundles_post_ra>
// kernel: tpu_custom_call.1
= control target key start
LH: loop header
LB: loop body
LE: loop exit
PB: predicated region body
PF: predicated region fallthrough
CT: control target
= control target key end

     0   :  { %s2502_s17 = smov 127   ;;  %s2503_s22 = smov 126   ;;  %vm125_vm0 = vcmask 261120   ;;  %v2504_v6 = vmov 0.0   ;;  %vm3281_vm1 = vmmov 0   ;;  %v2506_v8 = vmov 0   ;;  %s3270_s0 = inlined_call_operand.vmem [shape: bf16[2,16,326], index: 0, kind: input, shape index: {}]   ;;  %s3271_s1 = inlined_call_operand.vmem [shape: bf16[16,128], index: 1, kind: input, shape index: {}]   ;;  %s3272_s2 = inlined_call_operand.vmem [shape: bf16[16,144], index: 2, kind: input, shape index: {}]   ;;  %s3273_s3 = inlined_call_operand.vmem [shape: bf16[16,144], index: 3, kind: input, shape index: {}]   ;;  %s3274_s4 = inlined_call_operand.vmem [shape: bf16[16,16], index: 4, kind: input, shape index: {}]   ;;  %s3275_s5 = inlined_call_operand.vmem [shape: f32[16,288], index: 5, kind: input, shape index: {}]   ;;  %s3276_s6 = inlined_call_operand.vmem [shape: f32[16,288], index: 6, kind: input, shape index: {}]   ;;  %s3277_s7 = inlined_call_operand.vmem [shape: f32[16,128], index: 7, kind: input, shape index: {}]   ;;  %s3278_s8 = inlined_call_operand.vmem [shape: f32[1,288], index: 8, kind: input, shape index: {}]   ;;  %s3279_s9 = inlined_call_operand.vmem [shape: bf16[288,64], index: 9, kind: input, shape index: {}]   ;;  %s3280_s10 = inlined_call_operand.hbm [shape: f32[16,128], index: 10, kind: output, shape index: {}]  }
   0x1   :  { %v2576_v0 = vld [vmem:[%s3270_s0 + $0x4] ss:$12 sps:$4 sm:$0xff]   ;;  %v2581_v1 = vld [vmem:[%s3270_s0] ss:$12 sps:$4 sm:$0xff]   ;;  %v2407_v2 = vld [vmem:[%s3270_s0 + $0x8] ss:$12 sps:$4 sm:$0xff]   ;;  %2366 = vmatprep.subr.bf16.mxu0 %v2504_v6  ;;  %2368 = vmatprep.mubr.msk.bf16.mxu0 %vm3281_vm1, %v2504_v6 }
   0x2   :  { %146 = vrot.lane.b32.xlu0 %v2576_v0, %s2502_s17  ;;  %430 = vmatprep.subr.bf16.mxu1 %v2576_v0  ;;  %v2408_v3 = vld [vmem:[%s3270_s0 + $0x8] ss:$12 sps:$4 sm:$0xff]   ;;  %v2415_v5 = vld [vmem:[%s3271_s1] sm:$0xff]   ;;  %99 = vst [vmem:[#allocation2] sm:$0xff] %v2506_v8  ;;  %vm54_vm2 = vcmask 130048   ;;  %s2507_s1 = smov 110  }
   0x3   :  { %144 = vrot.lane.b32.xlu1 %v2581_v1, %s2502_s17  ;;  %431 = vmatpush1.bf16.msra.mxu1 %v2581_v1  ;;  %v2409_v4 = vld [vmem:[%s3270_s0 + $0x8] ss:$12 sps:$4 sm:$0xff]   ;;  %v2416_v7 = vld [vmem:[%s3274_s4] sm:$0xff]   ;;  %s2508_s19 = smov 109   ;;  %s2509_s23 = smov 108  }
   0x4   :  { %2367 = vmatpush3.bf16.msra.mxu0 %v2415_v5  ;;  %v2417_v9 = vld [vmem:[%s3270_s0 + $0x8] ss:$12 sps:$4 sm:$0xff]   ;;  %v2634_v12 = vld [vmem:[%s3270_s0 + $0x18] ss:$12 sps:$4 sm:$0xff]   ;;  %v2418_v13 = vld [vmem:[%s3270_s0 + $0x20] ss:$12 sps:$4 sm:$0xff]  }
   0x5   :  { %473 = vmatprep.subr.bf16.mxu0 %v2506_v8  ;;  %v2625_v10 = vld [vmem:[%s3270_s0 + $0x1c] ss:$12 sps:$4 sm:$0xff]   ;;  %126 = vst.msk [vmem:[#allocation3 + $0x10] sm:$0xff] %vm125_vm0, %v2417_v9  ;;  %1146 = vst [vmem:[#allocation3] sm:$0xff] %v2634_v12  ;;  %s2510_s26 = smov 92   ;;  %s2511_s11 = smov 91  }
   0x6   :  { %148 = vrot.lane.b32.xlu0 %v2407_v2, %s2502_s17  ;;  %v2410_v11 = vld [vmem:[%s3270_s0 + $0x8] ss:$12 sps:$4 sm:$0xff]   ;;  %1147 = vst [vmem:[#allocation3 + $0x8] sm:$0xff] %v2625_v10  ;;  %v2424_v18 = vld [vmem:[%s3272_s2 + $0x4] ss:$8 sps:$4 sm:$0xff]   ;;  %s2512_s13 = smov 90  }
   0x7   :  { %178 = vrot.lane.b32.xlu1 %v2576_v0, %s2503_s22  ;;  %2369 = vmatmul.mubr.msk.bf16.vlgmr.msra.gmra.mrb[0].mxu0 %vm54_vm2, %v2416_v7  ;;  %v2411_v14 = vld [vmem:[%s3270_s0 + $0x8] ss:$12 sps:$4 sm:$0xff]  }
   0x8   :  { %v2412_v16 = vld [vmem:[%s3270_s0 + $0x8] ss:$12 sps:$4 sm:$0xff]   ;;  %2199 = vmatprep.mubr.msk.bf16.mxu1 %vm54_vm2, %v2424_v18  ;;  %2200 = vmatprep.mubr.msk.bf16.mxu0 %vm54_vm2, %v2424_v18 }
   0x9   :  { %v2413_v17 = vld [vmem:[%s3270_s0 + $0x8] ss:$12 sps:$4 sm:$0xff]  }
   0xa   :  { %180 = vrot.lane.b32.xlu0 %v2408_v3, %s2503_s22  ;;  %v2414_v19 = vld [vmem:[%s3270_s0 + $0x8] ss:$12 sps:$4 sm:$0xff]  }
   0xb   :  { %176 = vrot.lane.b32.xlu1 %v2581_v1, %s2503_s22 }
   0xc   :  { %v387_v15 = vld [vmem:[#allocation3 + $0x10] sm:$0xff] }
   0xd   :  { %474 = vmatpush1.bf16.msra.mxu0 %v387_v15  ;;  %1148 = vst.msk [vmem:[#allocation3 + $0x10] sm:$0xff] %vm125_vm0, %v2418_v13 }
   0xe   :  { %210 = vrot.lane.b32.xlu0 %v2576_v0, %s2507_s1  ;;  %475 = vmatprep.subr.bf16.mxu0 %v2506_v8 }
   0xf   :  { %212 = vrot.lane.b32.xlu1 %v2409_v4, %s2507_s1 }
  0x12   :  { %208 = vrot.lane.b32.xlu0 %v2581_v1, %s2507_s1 }
  0x13   :  { %242 = vrot.lane.b32.xlu1 %v2576_v0, %s2508_s19 }
  0x16   :  { %244 = vrot.lane.b32.xlu0 %v2410_v11, %s2508_s19 }
  0x17   :  { %240 = vrot.lane.b32.xlu1 %v2581_v1, %s2508_s19 }
  0x1a   :  { %274 = vrot.lane.b32.xlu0 %v2576_v0, %s2509_s23 }
  0x1b   :  { %276 = vrot.lane.b32.xlu1 %v2411_v14, %s2509_s23 }
  0x1e   :  { %272 = vrot.lane.b32.xlu0 %v2581_v1, %s2509_s23 }
  0x1f   :  { %306 = vrot.lane.b32.xlu1 %v2576_v0, %s2510_s26 }
  0x22   :  { %308 = vrot.lane.b32.xlu0 %v2412_v16, %s2510_s26 }
  0x23   :  { %304 = vrot.lane.b32.xlu1 %v2581_v1, %s2510_s26 }
  0x26   :  { %338 = vrot.lane.b32.xlu0 %v2576_v0, %s2511_s11 }
  0x27   :  { %340 = vrot.lane.b32.xlu1 %v2413_v17, %s2511_s11 }
  0x2a   :  { %336 = vrot.lane.b32.xlu0 %v2581_v1, %s2511_s11 }
  0x2b   :  { %370 = vrot.lane.b32.xlu1 %v2576_v0, %s2512_s13 }
  0x2e   :  { %372 = vrot.lane.b32.xlu0 %v2414_v19, %s2512_s13 }
  0x2f   :  { %368 = vrot.lane.b32.xlu1 %v2581_v1, %s2512_s13 }
  0x30   :  { %15 = vsyncpa [#allocation6], 0  ;;  %vm150_vm3 = vcmask 1039360   ;;  %vm182_vm4 = vcmask 1031168   ;;  %vm214_vm5 = vcmask 900096   ;;  %vm246_vm6 = vcmask 891904  }
  0x31   :  { %vm278_vm7 = vcmask 883712   ;;  %vm310_vm8 = vcmask 752640   ;;  %vm3283_vm9 = vcmask 744448   ;;  %vm3282_vm10 = vcmask 736256   ;;  %v2422_v3 = vld [vmem:[%s3272_s2] ss:$8 sps:$4 sm:$0xff]  }
  0x32   :  { %v534_v13 = vlaneseq  ;;  %v412_v15 = vld [vmem:[%s3275_s5] sm:$0xff]  ;;  %v413_v17 = vld [vmem:[%s3275_s5 + $0x8] sm:$0xff]  ;;  %vm101_vm14 = vcmask 572416   ;;  %s2513_s16 = smov 19   ;;  %s2515_s24 = smov [#allocation5]  }
  0x33   :  { %v532_v18 = vld [vmem:[%s3278_s8] sm:$0x7]  ;;  %102 = vst.msk [vmem:[#allocation2 + $0x10] sm:$0xff] %vm101_vm14, %v2506_v8  ;;  %vm567_vm14 = vcmask 154624   ;;  %s2156_s25 = sshll.u32 %s2515_s24, 4  ;;  %s2157_s25 = int_to_ptr.vmem [resolvable:$true] %s2156_s25 }
  0x34   :  { %v2726_v14 = vshrl.u32 %v534_v13, 7  ;;  %v2425_v13 = vld [vmem:[%s3273_s3 + $0x4] ss:$8 sps:$4 sm:$0xff]   ;;  %p2483_p1 = scmp.lt.s32.totalorder %s2157_s25, %s2157_s25 }
  0x36   :  { %v536_v16 = vsub.s32 0, %v2726_v14 }
  0x74   :  { %v147_v20 = vpop.permute.xlu0 %146 }
  0x75   :  { %v145_v21 = vpop.permute.xlu1 %144 }
  0x76   :  { %v151_v25 = vsel %vm150_vm3, %v145_v21, %v147_v20  ;;  %v540_v21 = vsub.s32 1, %v2726_v14 }
  0x78   :  { %v149_v22 = vpop.permute.xlu0 %148 }
  0x79   :  { %v152_v23 = vsel %vm150_vm3, %v147_v20, %v149_v22  ;;  %158 = vst.msk [vmem:[#allocation3 + $0x28] sm:$0xff] %vm125_vm0, %v149_v22  ;;  %v179_v24 = vpop.permute.xlu1 %178  ;;  %v415_v20 = vld [vmem:[%s3275_s5 + $0x18] sm:$0xff] }
  0x7a   :  { %432 = vmatprep.subr.bf16.mxu1 %v152_v23 }
  0x7b   :  { %433 = vmatpush1.bf16.msra.mxu1 %v151_v25 }
  0x7c   :  { %v181_v26 = vpop.permute.xlu0 %180 }
  0x7d   :  { %v184_v27 = vsel %vm182_vm4, %v179_v24, %v181_v26  ;;  %190 = vst.msk [vmem:[#allocation3 + $0x40] sm:$0xff] %vm125_vm0, %v181_v26  ;;  %v177_v28 = vpop.permute.xlu1 %176 }
  0x7e   :  { %v183_v29 = vsel %vm182_vm4, %v177_v28, %v179_v24  ;;  %434 = vmatprep.subr.bf16.mxu1 %v184_v27  ;;  %v416_v24 = vld [vmem:[%s3275_s5 + $0x20] sm:$0xff]  ;;  %v537_v27 = vrot.slane %v532_v18, %v536_v16 }
  0x7f   :  { %435 = vmatpush1.bf16.msra.mxu1 %v183_v29 }
  0x80   :  { %v211_v30 = vpop.permute.xlu0 %210  ;;  %v390_v31 = vld [vmem:[#allocation3 + $0x28] sm:$0xff] }
  0x81   :  { %v213_v32 = vpop.permute.xlu1 %212  ;;  %476 = vmatpush1.bf16.msra.mxu0 %v390_v31  ;;  %v544_v31 = vsub.s32 2, %v2726_v14 }
  0x82   :  { %v216_v33 = vsel %vm214_vm5, %v211_v30, %v213_v32  ;;  %222 = vst.msk [vmem:[#allocation3 + $0x58] sm:$0xff] %vm125_vm0, %v213_v32  ;;  %477 = vmatprep.subr.bf16.mxu0 %v2506_v8 }
  0x83   :  { %436 = vmatprep.subr.bf16.mxu1 %v216_v33 }
  0x84   :  { %v209_v34 = vpop.permute.xlu0 %208  ;;  %v393_v35 = vld [vmem:[#allocation3 + $0x40] sm:$0xff] }
  0x85   :  { %v215_v36 = vsel %vm214_vm5, %v209_v34, %v211_v30  ;;  %v243_v37 = vpop.permute.xlu1 %242  ;;  %478 = vmatpush1.bf16.msra.mxu0 %v393_v35  ;;  %v414_v34 = vld [vmem:[%s3275_s5 + $0x10] sm:$0xff]  ;;  %v541_v35 = vrot.slane %v532_v18, %v540_v21 }
  0x86   :  { %479 = vmatprep.subr.bf16.mxu0 %v2506_v8  ;;  %437 = vmatpush1.bf16.msra.mxu1 %v215_v36 }
  0x88   :  { %v245_v38 = vpop.permute.xlu0 %244 }
  0x89   :  { %v248_v39 = vsel %vm246_vm6, %v243_v37, %v245_v38  ;;  %254 = vst.msk [vmem:[#allocation3 + $0x70] sm:$0xff] %vm125_vm0, %v245_v38  ;;  %v241_v40 = vpop.permute.xlu1 %240  ;;  %v396_v41 = vld [vmem:[#allocation3 + $0x58] sm:$0xff] }
  0x8a   :  { %v247_v42 = vsel %vm246_vm6, %v241_v40, %v243_v37  ;;  %480 = vmatpush1.bf16.msra.mxu0 %v396_v41  ;;  %438 = vmatprep.subr.bf16.mxu1 %v248_v39  ;;  %v417_v41 = vld [vmem:[%s3275_s5 + $0x28] sm:$0xff] }
  0x8b   :  { %481 = vmatprep.subr.bf16.mxu0 %v2506_v8  ;;  %439 = vmatpush1.bf16.msra.mxu1 %v247_v42 }
  0x8c   :  { %v275_v43 = vpop.permute.xlu0 %274 }
  0x8d   :  { %v277_v44 = vpop.permute.xlu1 %276 }
  0x8e   :  { %v280_v45 = vsel %vm278_vm7, %v275_v43, %v277_v44  ;;  %286 = vst.msk [vmem:[#allocation3 + $0x88] sm:$0xff] %vm125_vm0, %v277_v44 }
  0x8f   :  { %440 = vmatprep.subr.bf16.mxu1 %v280_v45  ;;  %v545_v45 = vrot.slane %v532_v18, %v544_v31  ;;  %v2430_v18 = vld [vmem:[%s3270_s0 + $0x20] ss:$12 sps:$4 sm:$0xff]  }
  0x90   :  { %v273_v46 = vpop.permute.xlu0 %272  ;;  %v399_v47 = vld [vmem:[#allocation3 + $0x70] sm:$0xff] }
  0x91   :  { %v279_v48 = vsel %vm278_vm7, %v273_v46, %v275_v43  ;;  %v307_v49 = vpop.permute.xlu1 %306  ;;  %482 = vmatpush1.bf16.msra.mxu0 %v399_v47 }
  0x92   :  { %483 = vmatprep.subr.bf16.mxu0 %v2506_v8  ;;  %441 = vmatpush1.bf16.msra.mxu1 %v279_v48 }
  0x94   :  { %v309_v50 = vpop.permute.xlu0 %308 }
  0x95   :  { %v312_v51 = vsel %vm310_vm8, %v307_v49, %v309_v50  ;;  %318 = vst.msk [vmem:[#allocation3 + $0xa0] sm:$0xff] %vm125_vm0, %v309_v50  ;;  %v305_v52 = vpop.permute.xlu1 %304  ;;  %v402_v53 = vld [vmem:[#allocation3 + $0x88] sm:$0xff] }
  0x96   :  { %v311_v54 = vsel %vm310_vm8, %v305_v52, %v307_v49  ;;  %484 = vmatpush1.bf16.msra.mxu0 %v402_v53  ;;  %442 = vmatprep.subr.bf16.mxu1 %v312_v51 }
  0x97   :  { %485 = vmatprep.subr.bf16.mxu0 %v2506_v8  ;;  %443 = vmatpush1.bf16.msra.mxu1 %v311_v54 }
  0x98   :  { %v339_v55 = vpop.permute.xlu0 %338 }
  0x99   :  { %v341_v56 = vpop.permute.xlu1 %340 }
  0x9a   :  { %v344_v57 = vsel %vm3283_vm9, %v339_v55, %v341_v56  ;;  %350 = vst.msk [vmem:[#allocation3 + $0xb8] sm:$0xff] %vm125_vm0, %v341_v56 }
  0x9b   :  { %444 = vmatprep.subr.bf16.mxu1 %v344_v57 }
  0x9c   :  { %v337_v58 = vpop.permute.xlu0 %336  ;;  %v405_v59 = vld [vmem:[#allocation3 + $0xa0] sm:$0xff] }
  0x9d   :  { %v343_v60 = vsel %vm3283_vm9, %v337_v58, %v339_v55  ;;  %v371_v61 = vpop.permute.xlu1 %370  ;;  %486 = vmatpush1.bf16.msra.mxu0 %v405_v59 }
  0x9e   :  { %487 = vmatprep.subr.bf16.mxu0 %v2506_v8  ;;  %445 = vmatpush1.bf16.msra.mxu1 %v343_v60 }
  0xa0   :  { %v373_v62 = vpop.permute.xlu0 %372 }
  0xa1   :  { %v376_v63 = vsel %vm3282_vm10, %v371_v61, %v373_v62  ;;  %382 = vst.msk [vmem:[#allocation3 + $0xd0] sm:$0xff] %vm125_vm0, %v373_v62  ;;  %v369_v0 = vpop.permute.xlu1 %368  ;;  %v408_v1 = vld [vmem:[#allocation3 + $0xb8] sm:$0xff] }
  0xa2   :  { %v375_v2 = vsel %vm3282_vm10, %v369_v0, %v371_v61  ;;  %488 = vmatpush1.bf16.msra.mxu0 %v408_v1  ;;  %446 = vmatprep.subr.bf16.mxu1 %v376_v63 }
  0xa3   :  { %489 = vmatprep.subr.bf16.mxu0 %v2506_v8  ;;  %447 = vmatpush1.bf16.msra.mxu1 %v375_v2 }
  0xa6   :  { %463 = vmatmul.mubr.bf16.vlgmr.msra.gmra.mrb[0].mxu1 %v2422_v3 }
  0xa7   :  { %2203 = vmatprep.mubr.msk.bf16.mxu1 %vm54_vm2, %v2425_v13 }
  0xa8   :  { %v411_v4 = vld [vmem:[#allocation3 + $0xd0] sm:$0xff] }
  0xa9   :  { %490 = vmatpush1.bf16.msra.mxu0 %v411_v4 }
  0xaa   :  { %834 = vmatprep.subr.bf16.mxu0 %v2506_v8 }
  0xac   :  { %506 = vmatmul.mubr.bf16.vlgmr.msra.gmra.mrb[4].mxu0 %v2422_v3 }
  0xad   :  { %2204 = vmatprep.mubr.msk.bf16.mxu0 %vm54_vm2, %v2425_v13  ;;  %v2427_v13 = vld [vmem:[%s3273_s3] ss:$8 sps:$4 sm:$0xff]  }
  0xda   :  { %v2722_v5 = vpop.f32.mrb[0].mxu0 }
  0xdb   :  { %v2370_v7 = vpop.f32.mrb[1].mxu0 }
  0xdc   :  { %v2724_v9 = vpop.f32.mrb[2].mxu0 }
  0xdd   :  { %v2371_v11 = vpop.f32.mrb[3].mxu0 }
 0x179   :  { %v464_v19 = vpop.f32.mrb[0].mxu1 }
 0x17a   :  { %v465_v22 = vadd.f32 %v464_v19, %v412_v15  ;;  %v466_v23 = vpop.f32.mrb[1].mxu1  ;;  %v2428_v15 = vld [vmem:[%s3270_s0 + $0x20] ss:$12 sps:$4 sm:$0xff]  }
 0x17b   :  { %v467_v25 = vadd.f32 %v466_v23, %v413_v17  ;;  %v468_v26 = vpop.f32.mrb[2].mxu1  ;;  %v2429_v17 = vld [vmem:[%s3270_s0 + $0x20] ss:$12 sps:$4 sm:$0xff]  }
 0x17c   :  { %vm514_vm11 = vcmp.ge.f32.partialorder %v465_v22, 0.0  ;;  %v520_v28 = vmul.f32 0.2, %v465_v22  ;;  %v469_v29 = vadd.f32 %v468_v26, %v415_v20  ;;  %v470_v30 = vpop.f32.mrb[3].mxu1  ;;  %v2431_v19 = vld [vmem:[%s3270_s0 + $0x20] ss:$12 sps:$4 sm:$0xff]  }
 0x17d   :  { %vm515_vm12 = vcmp.ge.f32.partialorder %v467_v25, 0.0  ;;  %v521_v32 = vmul.f32 0.2, %v467_v25  ;;  %v471_v33 = vadd.f32 %v470_v30, %v416_v24  ;;  %v2432_v20 = vld [vmem:[%s3270_s0 + $0x20] ss:$12 sps:$4 sm:$0xff]  }
 0x17e   :  { %v526_v36 = vsel %vm514_vm11, %v465_v22, %v520_v28  ;;  %vm517_vm13 = vcmp.ge.f32.partialorder %v469_v29, 0.0  ;;  %v523_v37 = vmul.f32 0.2, %v469_v29  ;;  %v2433_v22 = vld [vmem:[%s3270_s0 + $0x20] ss:$12 sps:$4 sm:$0xff]  }
 0x17f   :  { %v527_v38 = vsel %vm515_vm12, %v467_v25, %v521_v32  ;;  %vm518_vm15 = vcmp.ge.f32.partialorder %v471_v33, 0.0  ;;  %v524_v39 = vmul.f32 0.2, %v471_v33  ;;  %v507_v40 = vpop.f32.mrb[4].mxu0  ;;  %v549_v48 = vmul.f32 %v537_v27, %v526_v36  ;;  %v2434_v23 = vld [vmem:[%s3270_s0 + $0x20] ss:$12 sps:$4 sm:$0xff]  }
 0x180   :  { %v529_v42 = vsel %vm517_vm13, %v469_v29, %v523_v37  ;;  %v508_v43 = vadd.f32 %v507_v40, %v414_v34  ;;  %v509_v44 = vpop.f32.mrb[5].mxu0  ;;  %v550_v50 = vmul.f32 %v541_v35, %v527_v38  ;;  %vm573_vm13 = vcmask 1047704   ;;  %v2435_v24 = vld [vmem:[%s3270_s0 + $0x20] ss:$12 sps:$4 sm:$0xff]   ;;  %s2478_s0 = scalar_lea.vmem %s2157_s25, 256 }
 0x181   :  { %v530_v46 = vsel %vm518_vm15, %v471_v33, %v524_v39  ;;  %v510_v47 = vpop.f32.mrb[6].mxu0  ;;  %v552_v49 = vmul.f32 %v537_v27, %v529_v42  ;;  %vm576_vm15 = vcmask 416768   ;;  %p2479_p0 = scmp.ne.s32.totalorder %s2157_s25, %s2478_s0  ;;  %p2484_p2 = scmp.lt.s32.totalorder %s2478_s0, %s2478_s0 }
 0x182   :  { %vm516_vm11 = vcmp.ge.f32.partialorder %v508_v43, 0.0  ;;  %v522_v51 = vmul.f32 0.2, %v508_v43  ;;  %v511_v52 = vadd.f32 %v510_v47, %v417_v41  ;;  %v553_v53 = vmul.f32 %v541_v35, %v530_v46  ;;  %v512_v54 = vpop.f32.mrb[7].mxu0 }
 0x183   :  { %v555_v55 = vpack.c.bf16 %v552_v49, %v549_v48  ;;  %p2485_p3 = por %p2484_p2, %p2483_p1 }
 0x184   :  { %v528_v56 = vsel %vm516_vm11, %v508_v43, %v522_v51  ;;  %vm519_vm12 = vcmp.ge.f32.partialorder %v511_v52, 0.0  ;;  %v525_v57 = vmul.f32 0.2, %v511_v52  ;;  %v556_v58 = vpack.c.bf16 %v553_v53, %v550_v50 }
 0x185   :  { %561 = vrot.lane.b32.xlu0 %v555_v55, %s2513_s16  ;;  %v551_v59 = vmul.f32 %v545_v45, %v528_v56  ;;  %p2486_p4 = pnand %p2485_p3, %p2479_p0 }
 0x186   :  { %v531_v60 = vsel %vm519_vm12, %v511_v52, %v525_v57  ;;  %563 = vrot.lane.b32.xlu1 %v556_v58, %s2513_s16 }
 0x187   :  { %v554_v61 = vmul.f32 %v545_v45, %v531_v60 }
 0x189   :  { %v557_v62 = vpack.c.bf16 %v554_v61, %v551_v59 }
 0x18b   :  { %565 = vrot.lane.b32.xlu0 %v557_v62, %s2513_s16 }
 0x1f7   :  { %v562_v63 = vpop.permute.xlu0 %561 }
 0x1f8   :  { %574 = vst.msk [vmem:[#allocation2] sm:$0xff] %vm573_vm13, %v562_v63  ;;  %v564_v0 = vpop.permute.xlu1 %563 }
 0x1f9   :  { %v568_v1 = vsel %vm567_vm14, %v562_v63, %v564_v0 }
 0x1fa   :  { %791 = vmatprep.subr.bf16.mxu1 %v568_v1 }
 0x1fd   :  { %v566_v2 = vpop.permute.xlu0 %565 }
 0x1fe   :  { %v569_v3 = vsel %vm567_vm14, %v564_v0, %v566_v2 }
 0x1ff   :  { %v578_v4 = vld [vmem:[#allocation2] sm:$0xff]  ;;  %577 = vst.msk [vmem:[#allocation2 + $0x10] sm:$0xff] %vm576_vm15, %v569_v3 }
 0x200   :  { %590 = vrot.lane.b32.xlu1 %v578_v4, %s2502_s17  ;;  %610 = vrot.lane.b32.xlu0 %v578_v4, %s2503_s22 }
 0x201   :  { %792 = vmatpush1.bf16.msra.mxu1 %v578_v4 }
 0x204   :  { %630 = vrot.lane.b32.xlu1 %v578_v4, %s2507_s1  ;;  %650 = vrot.lane.b32.xlu0 %v578_v4, %s2508_s19 }
 0x206   :  { %v580_v7 = vld [vmem:[#allocation2 + $0x10] sm:$0xff] }
 0x207   :  { %583 = vst.msk [vmem:[#allocation4 + $0x10] sm:$0xff] %vm125_vm0, %v580_v7 }
 0x208   :  { %670 = vrot.lane.b32.xlu1 %v578_v4, %s2509_s23  ;;  %690 = vrot.lane.b32.xlu0 %v578_v4, %s2510_s26 }
 0x20c   :  { %710 = vrot.lane.b32.xlu1 %v578_v4, %s2511_s11  ;;  %594 = vrot.lane.b32.xlu0 %v580_v7, %s2502_s17 }
 0x20e   :  { %v748_v11 = vld [vmem:[#allocation4 + $0x10] sm:$0xff] }
 0x20f   :  { %835 = vmatpush1.bf16.msra.mxu0 %v748_v11 }
 0x210   :  { %592 = vrot.lane.b32.xlu1 %v568_v1, %s2502_s17  ;;  %612 = vrot.lane.b32.xlu0 %v568_v1, %s2503_s22 }
 0x211   :  { %836 = vmatprep.subr.bf16.mxu0 %v2506_v8 }
 0x214   :  { %614 = vrot.lane.b32.xlu1 %v580_v7, %s2503_s22  ;;  %634 = vrot.lane.b32.xlu0 %v580_v7, %s2507_s1 }
 0x218   :  { %632 = vrot.lane.b32.xlu1 %v568_v1, %s2507_s1  ;;  %652 = vrot.lane.b32.xlu0 %v568_v1, %s2508_s19 }
 0x21c   :  { %654 = vrot.lane.b32.xlu1 %v580_v7, %s2508_s19  ;;  %674 = vrot.lane.b32.xlu0 %v580_v7, %s2509_s23 }
 0x220   :  { %672 = vrot.lane.b32.xlu1 %v568_v1, %s2509_s23  ;;  %692 = vrot.lane.b32.xlu0 %v568_v1, %s2510_s26 }
 0x224   :  { %694 = vrot.lane.b32.xlu1 %v580_v7, %s2510_s26  ;;  %714 = vrot.lane.b32.xlu0 %v580_v7, %s2511_s11 }
 0x228   :  { %712 = vrot.lane.b32.xlu1 %v568_v1, %s2511_s11  ;;  %732 = vrot.lane.b32.xlu0 %v568_v1, %s2512_s13 }
 0x22c   :  { %734 = vrot.lane.b32.xlu1 %v580_v7, %s2512_s13  ;;  %730 = vrot.lane.b32.xlu0 %v578_v4, %s2512_s13  ;;  %v2436_v4 = vld [vmem:[%s3279_s9 + $0x40] sm:$0xff]  }
 0x230   :  { %1168 = vrot.lane.b32.xlu1 %v2625_v10, %s2502_s17  ;;  %1170 = vrot.lane.b32.xlu0 %v2428_v15, %s2502_s17  ;;  %v2437_v15 = vld [vmem:[%s3279_s9] sm:$0xff]  }
 0x234   :  { %1166 = vrot.lane.b32.xlu1 %v2634_v12, %s2502_s17  ;;  %1199 = vrot.lane.b32.xlu0 %v2625_v10, %s2503_s22 }
 0x238   :  { %1201 = vrot.lane.b32.xlu1 %v2429_v17, %s2503_s22  ;;  %1197 = vrot.lane.b32.xlu0 %v2634_v12, %s2503_s22 }
 0x23c   :  { %1230 = vrot.lane.b32.xlu1 %v2625_v10, %s2507_s1  ;;  %1232 = vrot.lane.b32.xlu0 %v2430_v18, %s2507_s1 }
 0x240   :  { %1228 = vrot.lane.b32.xlu1 %v2634_v12, %s2507_s1  ;;  %1261 = vrot.lane.b32.xlu0 %v2625_v10, %s2508_s19 }
 0x244   :  { %1263 = vrot.lane.b32.xlu1 %v2431_v19, %s2508_s19  ;;  %1259 = vrot.lane.b32.xlu0 %v2634_v12, %s2508_s19 }
 0x248   :  { %1292 = vrot.lane.b32.xlu1 %v2625_v10, %s2509_s23  ;;  %1294 = vrot.lane.b32.xlu0 %v2432_v20, %s2509_s23  ;;  %v2438_v20 = vld [vmem:[%s3279_s9 + $0x48] sm:$0xff]  }
 0x24c   :  { %1290 = vrot.lane.b32.xlu1 %v2634_v12, %s2509_s23  ;;  %1323 = vrot.lane.b32.xlu0 %v2625_v10, %s2510_s26 }
 0x250   :  { %1325 = vrot.lane.b32.xlu1 %v2433_v22, %s2510_s26  ;;  %1321 = vrot.lane.b32.xlu0 %v2634_v12, %s2510_s26 }
 0x254   :  { %1354 = vrot.lane.b32.xlu1 %v2625_v10, %s2511_s11  ;;  %1356 = vrot.lane.b32.xlu0 %v2434_v23, %s2511_s11  ;;  %v2439_v23 = vld [vmem:[%s3279_s9 + $0x8] sm:$0xff]  }
 0x258   :  { %1352 = vrot.lane.b32.xlu1 %v2634_v12, %s2511_s11  ;;  %1385 = vrot.lane.b32.xlu0 %v2625_v10, %s2512_s13 }
 0x25c   :  { %1387 = vrot.lane.b32.xlu1 %v2435_v24, %s2512_s13  ;;  %1383 = vrot.lane.b32.xlu0 %v2634_v12, %s2512_s13 }
 0x272   :  { %v591_v25 = vpop.permute.xlu1 %590  ;;  %v611_v26 = vpop.permute.xlu0 %610 }
 0x276   :  { %v631_v27 = vpop.permute.xlu1 %630  ;;  %v651_v28 = vpop.permute.xlu0 %650 }
 0x27a   :  { %v671_v29 = vpop.permute.xlu1 %670  ;;  %v691_v30 = vpop.permute.xlu0 %690 }
 0x27e   :  { %v711_v32 = vpop.permute.xlu1 %710  ;;  %v595_v33 = vpop.permute.xlu0 %594 }
 0x27f   :  { %603 = vst.msk [vmem:[#allocation4 + $0x28] sm:$0xff] %vm125_vm0, %v595_v33 }
 0x282   :  { %v593_v10 = vpop.permute.xlu1 %592  ;;  %v613_v34 = vpop.permute.xlu0 %612 }
 0x283   :  { %v596_v35 = vsel %vm150_vm3, %v591_v25, %v593_v10  ;;  %v597_v36 = vsel %vm150_vm3, %v593_v10, %v595_v33  ;;  %v616_v40 = vsel %vm182_vm4, %v611_v26, %v613_v34  ;;  %v2442_v33 = vld [vmem:[%s3279_s9 + $0x58] sm:$0xff]  }
 0x284   :  { %793 = vmatprep.subr.bf16.mxu1 %v597_v36 }
 0x285   :  { %794 = vmatpush1.bf16.msra.mxu1 %v596_v35  ;;  %v2443_v35 = vld [vmem:[%s3279_s9 + $0x18] sm:$0xff]  }
 0x286   :  { %v615_v37 = vpop.permute.xlu1 %614  ;;  %v635_v12 = vpop.permute.xlu0 %634  ;;  %v751_v38 = vld [vmem:[#allocation4 + $0x28] sm:$0xff] }
 0x287   :  { %v617_v39 = vsel %vm182_vm4, %v613_v34, %v615_v37  ;;  %623 = vst.msk [vmem:[#allocation4 + $0x40] sm:$0xff] %vm125_vm0, %v615_v37  ;;  %643 = vst.msk [vmem:[#allocation4 + $0x58] sm:$0xff] %vm125_vm0, %v635_v12  ;;  %837 = vmatpush1.bf16.msra.mxu0 %v751_v38 }
 0x288   :  { %838 = vmatprep.subr.bf16.mxu0 %v2506_v8  ;;  %795 = vmatprep.subr.bf16.mxu1 %v617_v39  ;;  %v2445_v39 = vld [vmem:[%s3279_s9 + $0x20] sm:$0xff]  }
 0x289   :  { %796 = vmatpush1.bf16.msra.mxu1 %v616_v40 }
 0x28a   :  { %v633_v41 = vpop.permute.xlu1 %632  ;;  %v653_v42 = vpop.permute.xlu0 %652 }
 0x28b   :  { %v636_v43 = vsel %vm214_vm5, %v631_v27, %v633_v41  ;;  %v637_v44 = vsel %vm214_vm5, %v633_v41, %v635_v12  ;;  %v656_v49 = vsel %vm246_vm6, %v651_v28, %v653_v42  ;;  %v2440_v27 = vld [vmem:[%s3279_s9 + $0x50] sm:$0xff]   ;;  %v2444_v12 = vld [vmem:[%s3279_s9 + $0x60] sm:$0xff]  }
 0x28c   :  { %797 = vmatprep.subr.bf16.mxu1 %v637_v44  ;;  %v2449_v44 = vld [vmem:[%s3279_s9 + $0x70] sm:$0xff]  }
 0x28d   :  { %798 = vmatpush1.bf16.msra.mxu1 %v636_v43  ;;  %v2447_v43 = vld [vmem:[%s3279_s9 + $0x28] sm:$0xff]  }
 0x28e   :  { %v655_v45 = vpop.permute.xlu1 %654  ;;  %v675_v46 = vpop.permute.xlu0 %674  ;;  %v754_v47 = vld [vmem:[#allocation4 + $0x40] sm:$0xff]  ;;  %v757_v52 = vld [vmem:[#allocation4 + $0x58] sm:$0xff] }
 0x28f   :  { %v657_v48 = vsel %vm246_vm6, %v653_v42, %v655_v45  ;;  %663 = vst.msk [vmem:[#allocation4 + $0x70] sm:$0xff] %vm125_vm0, %v655_v45  ;;  %683 = vst.msk [vmem:[#allocation4 + $0x88] sm:$0xff] %vm125_vm0, %v675_v46  ;;  %839 = vmatpush1.bf16.msra.mxu0 %v754_v47  ;;  %v2446_v42 = vld [vmem:[%s3279_s9 + $0x68] sm:$0xff]   ;;  %v2450_v45 = vld [vmem:[%s3279_s9 + $0x30] sm:$0xff]  }
 0x290   :  { %840 = vmatprep.subr.bf16.mxu0 %v2506_v8  ;;  %799 = vmatprep.subr.bf16.mxu1 %v657_v48  ;;  %v2448_v47 = vld [vmem:[%s3279_s9 + $0x80] sm:$0xff]   ;;  %v2453_v48 = vld [vmem:[%s3279_s9 + $0x38] sm:$0xff]  }
 0x291   :  { %800 = vmatpush1.bf16.msra.mxu1 %v656_v49 }
 0x292   :  { %v673_v50 = vpop.permute.xlu1 %672  ;;  %v693_v51 = vpop.permute.xlu0 %692 }
 0x293   :  { %v676_v53 = vsel %vm278_vm7, %v671_v29, %v673_v50  ;;  %v677_v54 = vsel %vm278_vm7, %v673_v50, %v675_v46  ;;  %841 = vmatpush1.bf16.msra.mxu0 %v757_v52  ;;  %v696_v59 = vsel %vm310_vm8, %v691_v30, %v693_v51  ;;  %v2441_v29 = vld [vmem:[%s3279_s9 + $0x10] sm:$0xff]   ;;  %v2452_v46 = vld [vmem:[%s3279_s9 + $0x78] sm:$0xff]   ;;  %v2451_v50 = vld [vmem:[%s3279_s9 + $0x88] sm:$0xff]  }
 0x294   :  { %842 = vmatprep.subr.bf16.mxu0 %v2506_v8  ;;  %801 = vmatprep.subr.bf16.mxu1 %v677_v54  ;;  %v1400_v52 = vld [vmem:[#allocation3 + $0x8] sm:$0xff] }
 0x295   :  { %802 = vmatpush1.bf16.msra.mxu1 %v676_v53 }
 0x296   :  { %v695_v55 = vpop.permute.xlu1 %694  ;;  %v715_v56 = vpop.permute.xlu0 %714  ;;  %v760_v57 = vld [vmem:[#allocation4 + $0x70] sm:$0xff]  ;;  %v763_v62 = vld [vmem:[#allocation4 + $0x88] sm:$0xff] }
 0x297   :  { %v697_v58 = vsel %vm310_vm8, %v693_v51, %v695_v55  ;;  %703 = vst.msk [vmem:[#allocation4 + $0xa0] sm:$0xff] %vm125_vm0, %v695_v55  ;;  %723 = vst.msk [vmem:[#allocation4 + $0xb8] sm:$0xff] %vm125_vm0, %v715_v56  ;;  %843 = vmatpush1.bf16.msra.mxu0 %v760_v57 }
 0x298   :  { %844 = vmatprep.subr.bf16.mxu0 %v2506_v8  ;;  %803 = vmatprep.subr.bf16.mxu1 %v697_v58 }
 0x299   :  { %804 = vmatpush1.bf16.msra.mxu1 %v696_v59 }
 0x29a   :  { %v713_v60 = vpop.permute.xlu1 %712  ;;  %v733_v61 = vpop.permute.xlu0 %732 }
 0x29b   :  { %v716_v63 = vsel %vm3283_vm9, %v711_v32, %v713_v60  ;;  %v717_v0 = vsel %vm3283_vm9, %v713_v60, %v715_v56  ;;  %845 = vmatpush1.bf16.msra.mxu0 %v763_v62 }
 0x29c   :  { %846 = vmatprep.subr.bf16.mxu0 %v2506_v8  ;;  %805 = vmatprep.subr.bf16.mxu1 %v717_v0 }
 0x29d   :  { %806 = vmatpush1.bf16.msra.mxu1 %v716_v63 }
 0x29e   :  { %v735_v1 = vpop.permute.xlu1 %734  ;;  %v731_v2 = vpop.permute.xlu0 %730  ;;  %v766_v3 = vld [vmem:[#allocation4 + $0xa0] sm:$0xff]  ;;  %v769_v17 = vld [vmem:[#allocation4 + $0xb8] sm:$0xff] }
 0x29f   :  { %v737_v7 = vsel %vm3282_vm10, %v733_v61, %v735_v1  ;;  %743 = vst.msk [vmem:[#allocation4 + $0xd0] sm:$0xff] %vm125_vm0, %v735_v1  ;;  %v736_v11 = vsel %vm3282_vm10, %v731_v2, %v733_v61  ;;  %847 = vmatpush1.bf16.msra.mxu0 %v766_v3 }
 0x2a0   :  { %848 = vmatprep.subr.bf16.mxu0 %v2506_v8  ;;  %807 = vmatprep.subr.bf16.mxu1 %v737_v7 }
 0x2a1   :  { %808 = vmatpush1.bf16.msra.mxu1 %v736_v11 }
 0x2a2   :  { %2316 = vmatprep.subr.bf16.mxu1 %v2436_v4  ;;  %v1169_v18 = vpop.permute.xlu1 %1168  ;;  %v1171_v19 = vpop.permute.xlu0 %1170 }
 0x2a3   :  { %849 = vmatpush1.bf16.msra.mxu0 %v769_v17  ;;  %v2904_v22 = vsel %vm150_vm3, %v1169_v18, %v1171_v19  ;;  %1179 = vst.msk [vmem:[#allocation3 + $0x28] sm:$0xff] %vm125_vm0, %v1171_v19 }
 0x2a4   :  { %850 = vmatprep.subr.bf16.mxu0 %v2506_v8  ;;  %824 = vmatmul.mubr.bf16.vlgmr.msra.gmra.mrb[4].mxu1 %v2427_v13 }
 0x2a5   :  { %2317 = vmatpush3.bf16.msra.mxu1 %v2437_v15 }
 0x2a6   :  { %v772_v24 = vld [vmem:[#allocation4 + $0xd0] sm:$0xff]  ;;  %2318 = vmatprep.subr.bf16.mxu1 %v2438_v20  ;;  %v1167_v25 = vpop.permute.xlu1 %1166  ;;  %v1200_v26 = vpop.permute.xlu0 %1199 }
 0x2a7   :  { %851 = vmatpush1.bf16.msra.mxu0 %v772_v24  ;;  %v2915_v28 = vsel %vm150_vm3, %v1167_v25, %v1169_v18  ;;  %v3013_v20 = vld [vmem:[%s3276_s6] sm:$0xff]  ;;  %v3023_v25 = vld [vmem:[%s3276_s6 + $0x18] sm:$0xff] }
 0x2a8   :  { %2372 = vmatprep.subr.bf16.mxu0 %v2504_v6 }
 0x2a9   :  { %2319 = vmatpush3.bf16.msra.mxu1 %v2439_v23  ;;  %v3018_v23 = vld [vmem:[%s3276_s6 + $0x8] sm:$0xff] }
 0x2aa   :  { %867 = vmatmul.mubr.bf16.vlgmr.msra.gmra.mrb[8].mxu0 %v2427_v13  ;;  %2320 = vmatprep.subr.bf16.mxu1 %v2440_v27  ;;  %v1202_v30 = vpop.permute.xlu1 %1201  ;;  %v1198_v32 = vpop.permute.xlu0 %1197 }
 0x2ab   :  { %v2925_v10 = vsel %vm182_vm4, %v1200_v26, %v1202_v30  ;;  %1210 = vst.msk [vmem:[#allocation3 + $0x40] sm:$0xff] %vm125_vm0, %v1202_v30  ;;  %v2929_v34 = vsel %vm182_vm4, %v1198_v32, %v1200_v26  ;;  %2376 = vmatprep.mubr.msk.bf16.mxu0 %vm3281_vm1, %v2504_v6  ;;  %2373 = vmatpush3.bf16.msra.mxu0 %v2448_v47 }
 0x2ac   :  { %2374 = vmatprep.subr.bf16.mxu0 %v2504_v6 }
 0x2ad   :  { %2321 = vmatpush3.bf16.msra.mxu1 %v2441_v29  ;;  %v3029_v29 = vld [vmem:[%s3276_s6 + $0x20] sm:$0xff] }
 0x2ae   :  { %2322 = vmatprep.subr.bf16.mxu1 %v2442_v33  ;;  %v1231_v36 = vpop.permute.xlu1 %1230  ;;  %v1233_v37 = vpop.permute.xlu0 %1232 }
 0x2af   :  { %v2940_v38 = vsel %vm214_vm5, %v1231_v36, %v1233_v37  ;;  %1241 = vst.msk [vmem:[#allocation3 + $0x58] sm:$0xff] %vm125_vm0, %v1233_v37  ;;  %2375 = vmatpush3.bf16.msra.mxu0 %v2451_v50  ;;  %v3036_v37 = vld [vmem:[%s3276_s6 + $0x10] sm:$0xff] }
 0x2b0   :  { %1444 = vmatprep.subr.bf16.mxu0 %v1400_v52 }
 0x2b1   :  { %2323 = vmatpush3.bf16.msra.mxu1 %v2443_v35 }
 0x2b2   :  { %2324 = vmatprep.subr.bf16.mxu1 %v2444_v12  ;;  %v1229_v40 = vpop.permute.xlu1 %1228  ;;  %v1262_v49 = vpop.permute.xlu0 %1261 }
 0x2b3   :  { %v2947_v41 = vsel %vm214_vm5, %v1229_v40, %v1231_v36 }
 0x2b5   :  { %2325 = vmatpush3.bf16.msra.mxu1 %v2445_v39 }
 0x2b6   :  { %2326 = vmatprep.subr.bf16.mxu1 %v2446_v42  ;;  %v1264_v51 = vpop.permute.xlu1 %1263  ;;  %v1260_v54 = vpop.permute.xlu0 %1259 }
 0x2b7   :  { %v2976_v53 = vsel %vm246_vm6, %v1262_v49, %v1264_v51  ;;  %1272 = vst.msk [vmem:[#allocation3 + $0x70] sm:$0xff] %vm125_vm0, %v1264_v51  ;;  %v2980_v55 = vsel %vm246_vm6, %v1260_v54, %v1262_v49 }
 0x2b9   :  { %2327 = vmatpush3.bf16.msra.mxu1 %v2447_v43 }
 0x2ba   :  { %2328 = vmatprep.subr.bf16.mxu1 %v2449_v44  ;;  %v1293_v56 = vpop.permute.xlu1 %1292  ;;  %v1295_v57 = vpop.permute.xlu0 %1294  ;;  %v3042_v44 = vld [vmem:[%s3276_s6 + $0x28] sm:$0xff] }
 0x2bb   :  { %v2983_v58 = vsel %vm278_vm7, %v1293_v56, %v1295_v57  ;;  %1303 = vst.msk [vmem:[#allocation3 + $0x88] sm:$0xff] %vm125_vm0, %v1295_v57 }
 0x2bd   :  { %2329 = vmatpush3.bf16.msra.mxu1 %v2450_v45 }
 0x2be   :  { %2330 = vmatprep.subr.bf16.mxu1 %v2452_v46  ;;  %v1291_v59 = vpop.permute.xlu1 %1290  ;;  %v1324_v61 = vpop.permute.xlu0 %1323 }
 0x2bf   :  { %v2987_v60 = vsel %vm278_vm7, %v1291_v59, %v1293_v56 }
 0x2c1   :  { %2331 = vmatpush3.bf16.msra.mxu1 %v2453_v48 }
 0x2c2   :  { %1487 = vmatprep.subr.bf16.mxu1 %v2506_v8  ;;  %v1326_v62 = vpop.permute.xlu1 %1325  ;;  %v1322_v0 = vpop.permute.xlu0 %1321 }
 0x2c3   :  { %v2990_v63 = vsel %vm310_vm8, %v1324_v61, %v1326_v62  ;;  %1334 = vst.msk [vmem:[#allocation3 + $0xa0] sm:$0xff] %vm125_vm0, %v1326_v62  ;;  %v2994_v1 = vsel %vm310_vm8, %v1322_v0, %v1324_v61  ;;  %v1401_v61 = vld [vmem:[#allocation3 + $0x10] sm:$0xff] }
 0x2c4   :  { %v2454_v0 = vld [vmem:[%s3272_s2 + $0x4] ss:$8 sps:$4 sm:$0xff]  }
 0x2c6   :  { %v1355_v2 = vpop.permute.xlu1 %1354  ;;  %v1357_v3 = vpop.permute.xlu0 %1356 }
 0x2c7   :  { %v2997_v4 = vsel %vm3283_vm9, %v1355_v2, %v1357_v3  ;;  %1365 = vst.msk [vmem:[#allocation3 + $0xb8] sm:$0xff] %vm125_vm0, %v1357_v3 }
 0x2ca   :  { %v1353_v7 = vpop.permute.xlu1 %1352  ;;  %v1386_v13 = vpop.permute.xlu0 %1385 }
 0x2cb   :  { %v3001_v11 = vsel %vm3283_vm9, %v1353_v7, %v1355_v2 }
 0x2ce   :  { %v1388_v15 = vpop.permute.xlu1 %1387  ;;  %v1384_v18 = vpop.permute.xlu0 %1383 }
 0x2cf   :  { %v3004_v17 = vsel %vm3282_vm10, %v1386_v13, %v1388_v15  ;;  %1396 = vst.msk [vmem:[#allocation3 + $0xd0] sm:$0xff] %vm125_vm0, %v1388_v15  ;;  %v3008_v19 = vsel %vm3282_vm10, %v1384_v18, %v1386_v13  ;;  %v1399_v13 = vld [vmem:[#allocation3] sm:$0xff]  ;;  %v1404_v15 = vld [vmem:[#allocation3 + $0x28] sm:$0xff] }
 0x2d0   :  { %v1407_v18 = vld [vmem:[#allocation3 + $0x40] sm:$0xff] }
 0x377   :  { %v825_v24 = vpop.f32.mrb[4].mxu1 }
 0x378   :  { %v826_v26 = vadd.f32 %v825_v24, %v3013_v20  ;;  %v827_v27 = vpop.f32.mrb[5].mxu1  ;;  %v1410_v24 = vld [vmem:[#allocation3 + $0x58] sm:$0xff] }
 0x379   :  { %v828_v30 = vadd.f32 %v827_v27, %v3018_v23  ;;  %v829_v32 = vpop.f32.mrb[6].mxu1 }
 0x37a   :  { %vm875_vm11 = vcmp.ge.f32.partialorder %v826_v26, 0.0  ;;  %v881_v33 = vmul.f32 0.2, %v826_v26  ;;  %v830_v35 = vadd.f32 %v829_v32, %v3023_v25  ;;  %v831_v36 = vpop.f32.mrb[7].mxu1  ;;  %v1428_v32 = vld [vmem:[%s3275_s5 + $0x10] sm:$0xff] }
 0x37b   :  { %vm876_vm12 = vcmp.ge.f32.partialorder %v828_v30, 0.0  ;;  %v882_v12 = vmul.f32 0.2, %v828_v30  ;;  %v832_v39 = vadd.f32 %v831_v36, %v3029_v29 }
 0x37c   :  { %v887_v40 = vsel %vm875_vm11, %v826_v26, %v881_v33  ;;  %vm878_vm1 = vcmp.ge.f32.partialorder %v830_v35, 0.0  ;;  %v884_v42 = vmul.f32 0.2, %v830_v35  ;;  %v1431_v33 = vld [vmem:[%s3275_s5 + $0x28] sm:$0xff] }
 0x37d   :  { %v868_v43 = vpop.f32.mrb[8].mxu0  ;;  %vm879_vm10 = vcmp.ge.f32.partialorder %v832_v39, 0.0  ;;  %v885_v45 = vmul.f32 0.2, %v832_v39  ;;  %v888_v46 = vsel %vm876_vm12, %v828_v30, %v882_v12  ;;  %v1546_v12 = vld [vmem:[%s3278_s8] sm:$0x7] }
 0x37e   :  { %v869_v47 = vadd.f32 %v868_v43, %v3036_v37  ;;  %v870_v48 = vpop.f32.mrb[9].mxu0  ;;  %v890_v49 = vsel %vm878_vm1, %v830_v35, %v884_v42  ;;  %v1559_v42 = vrot.slane %v1546_v12, %v544_v31  ;;  %v1427_v43 = vld [vmem:[%s3275_s5 + $0x8] sm:$0xff] }
 0x37f   :  { %v871_v50 = vpop.f32.mrb[10].mxu0  ;;  %v893_v51 = vpack.c.bf16 %v890_v49, %v887_v40  ;;  %v891_v52 = vsel %vm879_vm10, %v832_v39, %v885_v45  ;;  %v1426_v39 = vld [vmem:[%s3275_s5] sm:$0xff]  ;;  %v1429_v49 = vld [vmem:[%s3275_s5 + $0x18] sm:$0xff] }
 0x380   :  { %v883_v54 = vmul.f32 0.2, %v869_v47  ;;  %v872_v56 = vadd.f32 %v871_v50, %v3042_v44  ;;  %v873_v57 = vpop.f32.mrb[11].mxu0  ;;  %v894_v59 = vpack.c.bf16 %v891_v52, %v888_v46  ;;  %vm877_vm11 = vcmp.ge.f32.partialorder %v869_v47, 0.0  ;;  %v1430_v52 = vld [vmem:[%s3275_s5 + $0x20] sm:$0xff] }
 0x382   :  { %vm880_vm9 = vcmp.ge.f32.partialorder %v872_v56, 0.0  ;;  %v886_v62 = vmul.f32 0.2, %v872_v56  ;;  %1075 = vmatprep.mubr.bf16.mxu1 %v894_v59  ;;  %v889_v2 = vsel %vm877_vm11, %v869_v47, %v883_v54  ;;  %v1551_v59 = vrot.slane %v1546_v12, %v536_v16 }
 0x383   :  { %1076 = vmatmul.mubr.bf16.vlgmr.msra.gmra.mrb[8].mxu1 %v893_v51 }
 0x384   :  { %v892_v3 = vsel %vm880_vm9, %v872_v56, %v886_v62  ;;  %1488 = vmatpush1.bf16.msra.mxu1 %v1401_v61  ;;  %2290 = vmatprep.mubr.msk.bf16.mxu1 %vm54_vm2, %v2454_v0 }
 0x385   :  { %v895_v7 = vpack.c.bf16 %v892_v3, %v889_v2  ;;  %1489 = vmatprep.subr.bf16.mxu1 %v2506_v8 }
 0x387   :  { %2377 = vmatmul.mubr.msk.bf16.vlgmr.msra.gmra.mrb[12].mxu0 %vm125_vm0, %v895_v7 }
 0x388   :  { %1445 = vmatpush1.bf16.msra.mxu0 %v1399_v13  ;;  %1490 = vmatpush1.bf16.msra.mxu1 %v1404_v15 }
 0x389   :  { %1446 = vmatprep.subr.bf16.mxu0 %v2904_v22  ;;  %1491 = vmatprep.subr.bf16.mxu1 %v2506_v8  ;;  %v1413_v22 = vld [vmem:[#allocation3 + $0x70] sm:$0xff] }
 0x38a   :  { %2289 = vmatprep.mubr.msk.bf16.mxu0 %vm54_vm2, %v2454_v0 }
 0x38c   :  { %1447 = vmatpush1.bf16.msra.mxu0 %v2915_v28  ;;  %1492 = vmatpush1.bf16.msra.mxu1 %v1407_v18  ;;  %v1416_v28 = vld [vmem:[#allocation3 + $0x88] sm:$0xff] }
 0x38d   :  { %1448 = vmatprep.subr.bf16.mxu0 %v2925_v10  ;;  %1493 = vmatprep.subr.bf16.mxu1 %v2506_v8  ;;  %v1419_v10 = vld [vmem:[#allocation3 + $0xa0] sm:$0xff] }
 0x390   :  { %1449 = vmatpush1.bf16.msra.mxu0 %v2929_v34  ;;  %1494 = vmatpush1.bf16.msra.mxu1 %v1410_v24  ;;  %v1422_v34 = vld [vmem:[#allocation3 + $0xb8] sm:$0xff] }
 0x391   :  { %1450 = vmatprep.subr.bf16.mxu0 %v2940_v38  ;;  %1495 = vmatprep.subr.bf16.mxu1 %v2506_v8  ;;  %v1425_v38 = vld [vmem:[#allocation3 + $0xd0] sm:$0xff] }
 0x394   :  { %1451 = vmatpush1.bf16.msra.mxu0 %v2947_v41  ;;  %1496 = vmatpush1.bf16.msra.mxu1 %v1413_v22  ;;  %v2456_v41 = vld [vmem:[%s3272_s2] ss:$8 sps:$4 sm:$0xff]   ;;  %v1555_v22 = vrot.slane %v1546_v12, %v540_v21 }
 0x395   :  { %1452 = vmatprep.subr.bf16.mxu0 %v2976_v53  ;;  %1497 = vmatprep.subr.bf16.mxu1 %v2506_v8 }
 0x398   :  { %1453 = vmatpush1.bf16.msra.mxu0 %v2980_v55  ;;  %1498 = vmatpush1.bf16.msra.mxu1 %v1416_v28 }
 0x399   :  { %1454 = vmatprep.subr.bf16.mxu0 %v2983_v58  ;;  %1499 = vmatprep.subr.bf16.mxu1 %v2506_v8 }
 0x39c   :  { %1455 = vmatpush1.bf16.msra.mxu0 %v2987_v60  ;;  %1500 = vmatpush1.bf16.msra.mxu1 %v1419_v10 }
 0x39d   :  { %1456 = vmatprep.subr.bf16.mxu0 %v2990_v63  ;;  %1501 = vmatprep.subr.bf16.mxu1 %v2506_v8 }
 0x3a0   :  { %1457 = vmatpush1.bf16.msra.mxu0 %v2994_v1  ;;  %1502 = vmatpush1.bf16.msra.mxu1 %v1422_v34 }
 0x3a1   :  { %1458 = vmatprep.subr.bf16.mxu0 %v2997_v4  ;;  %1503 = vmatprep.subr.bf16.mxu1 %v2506_v8 }
 0x3a4   :  { %1459 = vmatpush1.bf16.msra.mxu0 %v3001_v11  ;;  %1504 = vmatpush1.bf16.msra.mxu1 %v1425_v38 }
 0x3a5   :  { %1460 = vmatprep.subr.bf16.mxu0 %v3004_v17  ;;  %1845 = vmatprep.subr.bf16.mxu1 %v2506_v8 }
 0x3a7   :  { %1520 = vmatmul.mubr.bf16.vlgmr.msra.gmra.mrb[12].mxu1 %v2456_v41 }
 0x3a8   :  { %1461 = vmatpush1.bf16.msra.mxu0 %v3008_v19 }
 0x3ab   :  { %1477 = vmatmul.mubr.bf16.vlgmr.msra.gmra.mrb[16].mxu0 %v2456_v41 }
 0x456   :  { %v2332_v53 = vpop.f32.mrb[8].mxu1 }
 0x457   :  { %v2333_v55 = vpop.f32.mrb[9].mxu1 }
 0x458   :  { %v2334_v58 = vadd.f32 %v2333_v55, %v2332_v53  ;;  %v2335_v60 = vpop.f32.mrb[10].mxu1 }
 0x459   :  { %v2336_v63 = vpop.f32.mrb[11].mxu1 }
 0x45a   :  { %v1118_v1 = vpop.f32.mrb[12].mxu0  ;;  %v2337_v4 = vadd.f32 %v2336_v63, %v2335_v60 }
 0x45b   :  { %v2378_v11 = vpop.f32.mrb[13].mxu0  ;;  %v3080_v26 = vadd.f32 %v2334_v58, %v1118_v1 }
 0x45c   :  { %v1121_v17 = vpop.f32.mrb[14].mxu0 }
 0x45d   :  { %v2379_v27 = vpop.f32.mrb[15].mxu0  ;;  %v3082_v30 = vadd.f32 %v2337_v4, %v1121_v17 }
 0x47a   :  { %v1521_v19 = vpop.f32.mrb[12].mxu1 }
 0x47b   :  { %v1522_v35 = vadd.f32 %v1521_v19, %v1428_v32  ;;  %v1523_v36 = vpop.f32.mrb[13].mxu1  ;;  %v2457_v19 = vld [vmem:[%s3273_s3 + $0x4] ss:$8 sps:$4 sm:$0xff]  }
 0x47c   :  { %v1524_v40 = vpop.f32.mrb[14].mxu1  ;;  %2294 = vmatprep.mubr.msk.bf16.mxu1 %vm54_vm2, %v2457_v19  ;;  %2293 = vmatprep.mubr.msk.bf16.mxu0 %vm54_vm2, %v2457_v19  ;;  %vm3284_vm2 = vcmask 744448   ;;  %v2463_v19 = vld [vmem:[%s3279_s9 + $0x8] sm:$0xff]  }
 0x47d   :  { %vm1530_vm1 = vcmp.ge.f32.partialorder %v1522_v35, 0.0  ;;  %v1536_v45 = vmul.f32 0.2, %v1522_v35  ;;  %v1525_v46 = vadd.f32 %v1524_v40, %v1431_v33  ;;  %v1526_v47 = vpop.f32.mrb[15].mxu1 }
 0x47e   :  { %v1478_v48 = vpop.f32.mrb[16].mxu0 }
 0x47f   :  { %v1479_v50 = vadd.f32 %v1478_v48, %v1426_v39  ;;  %v1480_v51 = vpop.f32.mrb[17].mxu0  ;;  %v1542_v31 = vsel %vm1530_vm1, %v1522_v35, %v1536_v45  ;;  %vm1533_vm9 = vcmp.ge.f32.partialorder %v1525_v46, 0.0  ;;  %v1539_v54 = vmul.f32 0.2, %v1525_v46 }
 0x480   :  { %v1481_v56 = vadd.f32 %v1480_v51, %v1427_v43  ;;  %v1482_v57 = vpop.f32.mrb[18].mxu0  ;;  %v1565_v61 = vmul.f32 %v1559_v42, %v1542_v31 }
 0x481   :  { %vm1528_vm10 = vcmp.ge.f32.partialorder %v1479_v50, 0.0  ;;  %v1534_v62 = vmul.f32 0.2, %v1479_v50  ;;  %v1483_v0 = vadd.f32 %v1482_v57, %v1429_v49  ;;  %v1484_v2 = vpop.f32.mrb[19].mxu0  ;;  %v1545_v3 = vsel %vm1533_vm9, %v1525_v46, %v1539_v54 }
 0x482   :  { %vm1529_vm12 = vcmp.ge.f32.partialorder %v1481_v56, 0.0  ;;  %v1535_v7 = vmul.f32 0.2, %v1481_v56  ;;  %v1485_v13 = vadd.f32 %v1484_v2, %v1430_v52  ;;  %v1568_v15 = vmul.f32 %v1559_v42, %v1545_v3 }
 0x483   :  { %v1540_v18 = vsel %vm1528_vm10, %v1479_v50, %v1534_v62  ;;  %vm1531_vm11 = vcmp.ge.f32.partialorder %v1483_v0, 0.0  ;;  %v1537_v24 = vmul.f32 0.2, %v1483_v0 }
 0x484   :  { %v1541_v28 = vsel %vm1529_vm12, %v1481_v56, %v1535_v7  ;;  %vm1532_vm1 = vcmp.ge.f32.partialorder %v1485_v13, 0.0  ;;  %v1538_v10 = vmul.f32 0.2, %v1485_v13  ;;  %v1571_v34 = vpack.c.bf16 %v1568_v15, %v1565_v61 }
 0x485   :  { %v1543_v16 = vsel %vm1531_vm11, %v1483_v0, %v1537_v24  ;;  %v1563_v41 = vmul.f32 %v1551_v59, %v1540_v18  ;;  %v1564_v55 = vmul.f32 %v1555_v22, %v1541_v28 }
 0x486   :  { %v1544_v38 = vsel %vm1532_vm1, %v1485_v13, %v1538_v10  ;;  %v1566_v53 = vmul.f32 %v1551_v59, %v1543_v16 }
 0x487   :  { %v1567_v58 = vmul.f32 %v1555_v22, %v1544_v38 }
 0x488   :  { %v1569_v60 = vpack.c.bf16 %v1566_v53, %v1563_v41 }
 0x489   :  { %v1570_v63 = vpack.c.bf16 %v1567_v58, %v1564_v55 }
 0x48a   :  { %1575 = vrot.lane.b32.xlu1 %v1569_v60, %s2513_s16 }
 0x48b   :  { %1577 = vrot.lane.b32.xlu0 %v1570_v63, %s2513_s16 }
 0x48e   :  { %1579 = vrot.lane.b32.xlu1 %v1571_v34, %s2513_s16 }
 0x4fc   :  { %v1576_v14 = vpop.permute.xlu1 %1575 }
 0x4fd   :  { %1586 = vst.msk [vmem:[#allocation2] sm:$0xff] %vm573_vm13, %v1576_v14  ;;  %v1578_v21 = vpop.permute.xlu0 %1577 }
 0x4fe   :  { %v1581_v1 = vsel %vm567_vm14, %v1576_v14, %v1578_v21 }
 0x4ff   :  { %1802 = vmatprep.subr.bf16.mxu0 %v1581_v1 }
 0x500   :  { %v1580_v4 = vpop.permute.xlu1 %1579 }
 0x501   :  { %v1582_v11 = vsel %vm567_vm14, %v1578_v21, %v1580_v4  ;;  %v2460_v21 = vld [vmem:[%s3279_s9 + $0x40] sm:$0xff]  }
 0x502   :  { %1588 = vst.msk [vmem:[#allocation2 + $0x10] sm:$0xff] %vm576_vm15, %v1582_v11  ;;  %v2459_v11 = vld [vmem:[%s3273_s3] ss:$8 sps:$4 sm:$0xff]  }
 0x504   :  { %v1615_v17 = vld [vmem:[#allocation2] sm:$0xff] }
 0x505   :  { %1621 = vrot.lane.b32.xlu1 %v1615_v17, %s2503_s22  ;;  %1601 = vrot.lane.b32.xlu0 %v1615_v17, %s2502_s17 }
 0x506   :  { %1803 = vmatpush1.bf16.msra.mxu0 %v1615_v17 }
 0x509   :  { %1641 = vrot.lane.b32.xlu0 %v1615_v17, %s2507_s1  ;;  %1623 = vrot.lane.b32.xlu1 %v1581_v1, %s2503_s22  ;;  %v1597_v27 = vld [vmem:[#allocation2 + $0x10] sm:$0xff] }
 0x50a   :  { %1594 = vst.msk [vmem:[#allocation4 + $0x10] sm:$0xff] %vm125_vm0, %v1597_v27 }
 0x50d   :  { %1663 = vrot.lane.b32.xlu1 %v1581_v1, %s2508_s19  ;;  %1603 = vrot.lane.b32.xlu0 %v1581_v1, %s2502_s17 }
 0x511   :  { %1643 = vrot.lane.b32.xlu0 %v1581_v1, %s2507_s1  ;;  %1605 = vrot.lane.b32.xlu1 %v1597_v27, %s2502_s17  ;;  %v1759_v32 = vld [vmem:[#allocation4 + $0x10] sm:$0xff] }
 0x512   :  { %1846 = vmatpush1.bf16.msra.mxu1 %v1759_v32  ;;  %v2462_v32 = vld [vmem:[%s3279_s9 + $0x48] sm:$0xff]  }
 0x513   :  { %1847 = vmatprep.subr.bf16.mxu1 %v2506_v8 }
 0x515   :  { %1683 = vrot.lane.b32.xlu0 %v1581_v1, %s2509_s23  ;;  %1661 = vrot.lane.b32.xlu1 %v1615_v17, %s2508_s19 }
 0x519   :  { %1625 = vrot.lane.b32.xlu0 %v1597_v27, %s2503_s22  ;;  %1645 = vrot.lane.b32.xlu1 %v1597_v27, %s2507_s1 }
 0x51d   :  { %1681 = vrot.lane.b32.xlu0 %v1615_v17, %s2509_s23  ;;  %1703 = vrot.lane.b32.xlu1 %v1581_v1, %s2510_s26 }
 0x521   :  { %1665 = vrot.lane.b32.xlu0 %v1597_v27, %s2508_s19  ;;  %1685 = vrot.lane.b32.xlu1 %v1597_v27, %s2509_s23 }
 0x525   :  { %1723 = vrot.lane.b32.xlu0 %v1581_v1, %s2511_s11  ;;  %1701 = vrot.lane.b32.xlu1 %v1615_v17, %s2510_s26 }
 0x529   :  { %1705 = vrot.lane.b32.xlu0 %v1597_v27, %s2510_s26  ;;  %1725 = vrot.lane.b32.xlu1 %v1597_v27, %s2511_s11 }
 0x52d   :  { %1721 = vrot.lane.b32.xlu0 %v1615_v17, %s2511_s11  ;;  %1743 = vrot.lane.b32.xlu1 %v1581_v1, %s2512_s13 }
 0x531   :  { %1745 = vrot.lane.b32.xlu0 %v1597_v27, %s2512_s13  ;;  %1741 = vrot.lane.b32.xlu1 %v1615_v17, %s2512_s13  ;;  %v2461_v17 = vld [vmem:[%s3279_s9] sm:$0xff]  }
 0x577   :  { %v1602_v33 = vpop.permute.xlu0 %1601  ;;  %v1622_v35 = vpop.permute.xlu1 %1621 }
 0x57b   :  { %v1642_v36 = vpop.permute.xlu0 %1641  ;;  %v1624_v12 = vpop.permute.xlu1 %1623 }
 0x57c   :  { %v1627_v39 = vsel %vm182_vm4, %v1622_v35, %v1624_v12  ;;  %v2464_v35 = vld [vmem:[%s3279_s9 + $0x50] sm:$0xff]  }
 0x57f   :  { %v1604_v40 = vpop.permute.xlu0 %1603  ;;  %v1664_v42 = vpop.permute.xlu1 %1663 }
 0x580   :  { %v1607_v43 = vsel %vm150_vm3, %v1602_v33, %v1604_v40 }
 0x583   :  { %v1644_v45 = vpop.permute.xlu0 %1643  ;;  %v1606_v46 = vpop.permute.xlu1 %1605 }
 0x584   :  { %v1647_v47 = vsel %vm214_vm5, %v1642_v36, %v1644_v45  ;;  %v1608_v48 = vsel %vm150_vm3, %v1604_v40, %v1606_v46  ;;  %1614 = vst.msk [vmem:[#allocation4 + $0x28] sm:$0xff] %vm125_vm0, %v1606_v46  ;;  %vm3285_vm3 = vmmov %vm3284_vm2  ;;  %v2466_v36 = vld [vmem:[%s3279_s9 + $0x58] sm:$0xff]   ;;  %v2469_v40 = vld [vmem:[%s3279_s9 + $0x20] sm:$0xff]  }
 0x585   :  { %1804 = vmatprep.subr.bf16.mxu0 %v1608_v48  ;;  %v2474_v46 = vld [vmem:[%s3279_s9 + $0x30] sm:$0xff]   ;;  %v2472_v48 = vld [vmem:[%s3279_s9 + $0x80] sm:$0xff]  }
 0x586   :  { %1805 = vmatpush1.bf16.msra.mxu0 %v1607_v43  ;;  %v2471_v43 = vld [vmem:[%s3279_s9 + $0x28] sm:$0xff]  }
 0x587   :  { %v1684_v49 = vpop.permute.xlu0 %1683  ;;  %v1662_v50 = vpop.permute.xlu1 %1661 }
 0x588   :  { %v1667_v51 = vsel %vm246_vm6, %v1662_v50, %v1664_v42  ;;  %v2475_v50 = vld [vmem:[%s3279_s9 + $0x88] sm:$0xff]  }
 0x58b   :  { %v1626_v52 = vpop.permute.xlu0 %1625  ;;  %v1646_v31 = vpop.permute.xlu1 %1645  ;;  %v1762_v54 = vld [vmem:[#allocation4 + $0x28] sm:$0xff] }
 0x58c   :  { %v1628_v56 = vsel %vm182_vm4, %v1624_v12, %v1626_v52  ;;  %1634 = vst.msk [vmem:[#allocation4 + $0x40] sm:$0xff] %vm125_vm0, %v1626_v52  ;;  %v1648_v57 = vsel %vm214_vm5, %v1644_v45, %v1646_v31  ;;  %1654 = vst.msk [vmem:[#allocation4 + $0x58] sm:$0xff] %vm125_vm0, %v1646_v31  ;;  %1848 = vmatpush1.bf16.msra.mxu1 %v1762_v54  ;;  %vm3286_vm4 = vcmask 736256   ;;  %v2467_v12 = vld [vmem:[%s3279_s9 + $0x18] sm:$0xff]   ;;  %v2473_v45 = vld [vmem:[%s3279_s9 + $0x70] sm:$0xff]  }
 0x58d   :  { %1849 = vmatprep.subr.bf16.mxu1 %v2506_v8  ;;  %1806 = vmatprep.subr.bf16.mxu0 %v1628_v56  ;;  %vm3287_vm5 = vmmov %vm3286_vm4 }
 0x58e   :  { %1807 = vmatpush1.bf16.msra.mxu0 %v1627_v39  ;;  %v2468_v39 = vld [vmem:[%s3279_s9 + $0x60] sm:$0xff]  }
 0x58f   :  { %v1682_v59 = vpop.permute.xlu0 %1681  ;;  %v1704_v61 = vpop.permute.xlu1 %1703  ;;  %1808 = vmatprep.subr.bf16.mxu0 %v1648_v57 }
 0x590   :  { %v1687_v62 = vsel %vm278_vm7, %v1682_v59, %v1684_v49 }
 0x592   :  { %1809 = vmatpush1.bf16.msra.mxu0 %v1647_v47  ;;  %v2476_v47 = vld [vmem:[%s3279_s9 + $0x78] sm:$0xff]  }
 0x593   :  { %v1666_v0 = vpop.permute.xlu0 %1665  ;;  %v1686_v2 = vpop.permute.xlu1 %1685  ;;  %v1765_v3 = vld [vmem:[#allocation4 + $0x40] sm:$0xff]  ;;  %v1768_v24 = vld [vmem:[#allocation4 + $0x58] sm:$0xff] }
 0x594   :  { %v1668_v7 = vsel %vm246_vm6, %v1664_v42, %v1666_v0  ;;  %1674 = vst.msk [vmem:[#allocation4 + $0x70] sm:$0xff] %vm125_vm0, %v1666_v0  ;;  %v1688_v13 = vsel %vm278_vm7, %v1684_v49, %v1686_v2  ;;  %1694 = vst.msk [vmem:[#allocation4 + $0x88] sm:$0xff] %vm125_vm0, %v1686_v2  ;;  %1850 = vmatpush1.bf16.msra.mxu1 %v1765_v3  ;;  %vm3288_vm6 = vmmov 0   ;;  %v2470_v42 = vld [vmem:[%s3279_s9 + $0x68] sm:$0xff]   ;;  %v2477_v49 = vld [vmem:[%s3279_s9 + $0x38] sm:$0xff]  }
 0x595   :  { %1851 = vmatprep.subr.bf16.mxu1 %v2506_v8  ;;  %1810 = vmatprep.subr.bf16.mxu0 %v1668_v7 }
 0x596   :  { %1811 = vmatpush1.bf16.msra.mxu0 %v1667_v51 }
 0x597   :  { %v1724_v15 = vpop.permute.xlu0 %1723  ;;  %v1702_v18 = vpop.permute.xlu1 %1701  ;;  %1812 = vmatprep.subr.bf16.mxu0 %v1688_v13 }
 0x598   :  { %v1707_v22 = vsel %vm310_vm8, %v1702_v18, %v1704_v61  ;;  %1852 = vmatpush1.bf16.msra.mxu1 %v1768_v24 }
 0x599   :  { %1853 = vmatprep.subr.bf16.mxu1 %v2506_v8 }
 0x59a   :  { %1813 = vmatpush1.bf16.msra.mxu0 %v1687_v62 }
 0x59b   :  { %v1706_v28 = vpop.permute.xlu0 %1705  ;;  %v1726_v10 = vpop.permute.xlu1 %1725  ;;  %v1771_v16 = vld [vmem:[#allocation4 + $0x70] sm:$0xff]  ;;  %v1774_v55 = vld [vmem:[#allocation4 + $0x88] sm:$0xff] }
 0x59c   :  { %v1708_v34 = vsel %vm310_vm8, %v1704_v61, %v1706_v28  ;;  %1714 = vst.msk [vmem:[#allocation4 + $0xa0] sm:$0xff] %vm125_vm0, %v1706_v28  ;;  %v1728_v38 = vsel %vm3284_vm2, %v1724_v15, %v1726_v10  ;;  %1734 = vst.msk [vmem:[#allocation4 + $0xb8] sm:$0xff] %vm125_vm0, %v1726_v10  ;;  %1854 = vmatpush1.bf16.msra.mxu1 %v1771_v16 }
 0x59d   :  { %1855 = vmatprep.subr.bf16.mxu1 %v2506_v8  ;;  %1814 = vmatprep.subr.bf16.mxu0 %v1708_v34 }
 0x59e   :  { %1815 = vmatpush1.bf16.msra.mxu0 %v1707_v22 }
 0x59f   :  { %v1722_v41 = vpop.permute.xlu0 %1721  ;;  %v1744_v53 = vpop.permute.xlu1 %1743  ;;  %1816 = vmatprep.subr.bf16.mxu0 %v1728_v38 }
 0x5a0   :  { %v1727_v58 = vsel %vm3285_vm3, %v1722_v41, %v1724_v15  ;;  %1856 = vmatpush1.bf16.msra.mxu1 %v1774_v55 }
 0x5a1   :  { %1857 = vmatprep.subr.bf16.mxu1 %v2506_v8 }
 0x5a2   :  { %1817 = vmatpush1.bf16.msra.mxu0 %v1727_v58 }
 0x5a3   :  { %v1746_v60 = vpop.permute.xlu0 %1745  ;;  %v1742_v63 = vpop.permute.xlu1 %1741  ;;  %v1777_v14 = vld [vmem:[#allocation4 + $0xa0] sm:$0xff]  ;;  %v1780_v27 = vld [vmem:[#allocation4 + $0xb8] sm:$0xff] }
 0x5a4   :  { %v1748_v1 = vsel %vm3286_vm4, %v1744_v53, %v1746_v60  ;;  %1754 = vst.msk [vmem:[#allocation4 + $0xd0] sm:$0xff] %vm125_vm0, %v1746_v60  ;;  %v1747_v4 = vsel %vm3287_vm5, %v1742_v63, %v1744_v53  ;;  %1858 = vmatpush1.bf16.msra.mxu1 %v1777_v14 }
 0x5a5   :  { %1859 = vmatprep.subr.bf16.mxu1 %v2506_v8  ;;  %1818 = vmatprep.subr.bf16.mxu0 %v1748_v1 }
 0x5a6   :  { %1819 = vmatpush1.bf16.msra.mxu0 %v1747_v4 }
 0x5a7   :  { %2341 = vmatprep.subr.bf16.mxu0 %v2460_v21 }
 0x5a8   :  { %1860 = vmatpush1.bf16.msra.mxu1 %v1780_v27  ;;  %v42_v27 = vld [vmem:[%s3277_s7 + $0x8] sm:$0xff] }
 0x5a9   :  { %1861 = vmatprep.subr.bf16.mxu1 %v2506_v8  ;;  %1835 = vmatmul.mubr.bf16.vlgmr.msra.gmra.mrb[20].mxu0 %v2459_v11  ;;  %v2465_v8 = vld [vmem:[%s3279_s9 + $0x10] sm:$0xff]   ;;  %s2514_s9 = smov 64  }
 0x5aa   :  { %2342 = vmatpush3.bf16.msra.mxu0 %v2461_v17  ;;  %v41_v17 = vld [vmem:[%s3277_s7] sm:$0xff] }
 0x5ab   :  { %v1783_v33 = vld [vmem:[#allocation4 + $0xd0] sm:$0xff]  ;;  %2343 = vmatprep.subr.bf16.mxu0 %v2462_v32  ;;  %v93_v32 = vadd.f32 %v2722_v5, %v41_v17 }
 0x5ac   :  { %1862 = vmatpush1.bf16.msra.mxu1 %v1783_v33 }
 0x5ad   :  { %2380 = vmatprep.subr.bf16.mxu1 %v2504_v6 }
 0x5ae   :  { %2344 = vmatpush3.bf16.msra.mxu0 %v2463_v19 }
 0x5af   :  { %1878 = vmatmul.mubr.bf16.vlgmr.msra.gmra.mrb[16].mxu1 %v2459_v11  ;;  %2345 = vmatprep.subr.bf16.mxu0 %v2464_v35  ;;  %v96_v35 = vadd.f32 %v2724_v9, %v42_v27 }
 0x5b0   :  { %2384 = vmatprep.mubr.msk.bf16.mxu1 %vm3288_vm6, %v2504_v6  ;;  %2381 = vmatpush3.bf16.msra.mxu1 %v2472_v48 }
 0x5b1   :  { %2382 = vmatprep.subr.bf16.mxu1 %v2504_v6 }
 0x5b2   :  { %2346 = vmatpush3.bf16.msra.mxu0 %v2465_v8 }
 0x5b3   :  { %2347 = vmatprep.subr.bf16.mxu0 %v2466_v36 }
 0x5b4   :  { %2383 = vmatpush3.bf16.msra.mxu1 %v2475_v50 }
 0x5b6   :  { %2348 = vmatpush3.bf16.msra.mxu0 %v2467_v12 }
 0x5b7   :  { %2349 = vmatprep.subr.bf16.mxu0 %v2468_v39 }
 0x5ba   :  { %2350 = vmatpush3.bf16.msra.mxu0 %v2469_v40 }
 0x5bb   :  { %2351 = vmatprep.subr.bf16.mxu0 %v2470_v42 }
 0x5be   :  { %2352 = vmatpush3.bf16.msra.mxu0 %v2471_v43 }
 0x5bf   :  { %2353 = vmatprep.subr.bf16.mxu0 %v2473_v45 }
 0x5c2   :  { %2354 = vmatpush3.bf16.msra.mxu0 %v2474_v46 }
 0x5c3   :  { %2355 = vmatprep.subr.bf16.mxu0 %v2476_v47 }
 0x5c6   :  { %2356 = vmatpush3.bf16.msra.mxu0 %v2477_v49 }
 0x67c   :  { %v1836_v51 = vpop.f32.mrb[20].mxu0 }
 0x67d   :  { %v1837_v52 = vadd.f32 %v1836_v51, %v3013_v20  ;;  %v1838_v31 = vpop.f32.mrb[21].mxu0 }
 0x67e   :  { %v1839_v54 = vadd.f32 %v1838_v31, %v3018_v23  ;;  %v1840_v56 = vpop.f32.mrb[22].mxu0 }
 0x67f   :  { %v1892_v57 = vmul.f32 0.2, %v1837_v52  ;;  %v1841_v59 = vadd.f32 %v1840_v56, %v3023_v25  ;;  %v1842_v61 = vpop.f32.mrb[23].mxu0  ;;  %vm1886_vm7 = vcmp.ge.f32.partialorder %v1837_v52, 0.0 }
 0x680   :  { %v1893_v62 = vmul.f32 0.2, %v1839_v54  ;;  %v1843_v6 = vadd.f32 %v1842_v61, %v3029_v29  ;;  %vm1887_vm8 = vcmp.ge.f32.partialorder %v1839_v54, 0.0 }
 0x681   :  { %vm1889_vm13 = vcmp.ge.f32.partialorder %v1841_v59, 0.0  ;;  %v1895_v0 = vmul.f32 0.2, %v1841_v59  ;;  %v1898_v13 = vsel %vm1886_vm7, %v1837_v52, %v1892_v57 }
 0x682   :  { %v1879_v2 = vpop.f32.mrb[16].mxu1  ;;  %vm1890_vm14 = vcmp.ge.f32.partialorder %v1843_v6, 0.0  ;;  %v1896_v3 = vmul.f32 0.2, %v1843_v6  ;;  %v1899_v24 = vsel %vm1887_vm8, %v1839_v54, %v1893_v62 }
 0x683   :  { %v1880_v20 = vadd.f32 %v1879_v2, %v3036_v37  ;;  %v1881_v7 = vpop.f32.mrb[17].mxu1  ;;  %v1901_v23 = vsel %vm1889_vm13, %v1841_v59, %v1895_v0 }
 0x684   :  { %v1882_v15 = vpop.f32.mrb[18].mxu1  ;;  %v1904_v18 = vpack.c.bf16 %v1901_v23, %v1898_v13  ;;  %v1902_v25 = vsel %vm1890_vm14, %v1843_v6, %v1896_v3 }
 0x685   :  { %v1894_v22 = vmul.f32 0.2, %v1880_v20  ;;  %v1883_v28 = vadd.f32 %v1882_v15, %v3042_v44  ;;  %v1884_v10 = vpop.f32.mrb[19].mxu1  ;;  %v1905_v29 = vpack.c.bf16 %v1902_v25, %v1899_v24  ;;  %vm1888_vm15 = vcmp.ge.f32.partialorder %v1880_v20, 0.0 }
 0x687   :  { %vm1891_vm9 = vcmp.ge.f32.partialorder %v1883_v28, 0.0  ;;  %v1897_v16 = vmul.f32 0.2, %v1883_v28  ;;  %2086 = vmatprep.mubr.bf16.mxu0 %v1905_v29  ;;  %v1900_v34 = vsel %vm1888_vm15, %v1880_v20, %v1894_v22 }
 0x688   :  { %2087 = vmatmul.mubr.bf16.vlgmr.msra.gmra.mrb[24].mxu0 %v1904_v18 }
 0x689   :  { %v1903_v38 = vsel %vm1891_vm9, %v1883_v28, %v1897_v16 }
 0x68a   :  { %v1906_v37 = vpack.c.bf16 %v1903_v38, %v1900_v34 }
 0x68c   :  { %2385 = vmatmul.mubr.msk.bf16.vlgmr.msra.gmra.mrb[20].mxu1 %vm125_vm0, %v1906_v37  ;;  %vm2144_vm0 = vcmask 523264  }
 0x75b   :  { %v2357_v41 = vpop.f32.mrb[24].mxu0 }
 0x75c   :  { %v2358_v53 = vpop.f32.mrb[25].mxu0 }
 0x75d   :  { %v2359_v55 = vadd.f32 %v2358_v53, %v2357_v41  ;;  %v2360_v58 = vpop.f32.mrb[26].mxu0 }
 0x75e   :  { %v2361_v60 = vpop.f32.mrb[27].mxu0 }
 0x75f   :  { %v2129_v63 = vpop.f32.mrb[20].mxu1  ;;  %v2362_v14 = vadd.f32 %v2361_v60, %v2360_v58 }
 0x760   :  { %v2386_v44 = vpop.f32.mrb[21].mxu1  ;;  %v2130_v21 = vadd.f32 %v2359_v55, %v2129_v63 }
 0x761   :  { %v2132_v1 = vpop.f32.mrb[22].mxu1 }
 0x762   :  { %v2387_v4 = vpop.f32.mrb[23].mxu1  ;;  %v2133_v11 = vadd.f32 %v2362_v14, %v2132_v1  ;;  %2138 = vrot.lane.b32.xlu0 %v2130_v21, %s2514_s9 }
 0x764   :  { %2140 = vrot.lane.b32.xlu1 %v2133_v11, %s2514_s9 }
 0x7d4   :  { %v2139_v19 = vpop.permute.xlu0 %2138 }
 0x7d5   :  { %v2145_v33 = vsel %vm2144_vm0, %v3080_v26, %v2139_v19 }
 0x7d6   :  { %v2147_v8 = vadd.f32 %v2145_v33, %v93_v32  ;;  %v2141_v36 = vpop.permute.xlu1 %2140 }
 0x7d7   :  { %v2146_v12 = vsel %vm2144_vm0, %v3082_v30, %v2141_v36 }
 0x7d8   :  { %2149 = vst [vmem:[#allocation5] sm:$0xff] %v2147_v8  ;;  %v2148_v39 = vadd.f32 %v2146_v12, %v96_v35 }
 0x7da   :  { %2150 = vst [vmem:[#allocation5 + $0x8] sm:$0xff] %v2148_v39 }
 0x7db   :  { %2489 = shalt.err (!%p2486_p4)
}
 0x7dc   :  { %s2490_s28 = scalar_lea.hbm %s3280_s10, 256 }
 0x7dd   :  { %p2491_p5 = scmp.ne.s32.totalorder %s3280_s10, %s2490_s28  ;;  %p2494_p6 = scmp.lt.u32.totalorder %s2490_s28, %s3280_s10 }
 0x7df   :  { %p2496_p7 = pnand %p2494_p6, %p2491_p5 }
 0x7e1   :  { %2499 = shalt.err (!%p2496_p7)
}
 0x7e2   :  { %s2516_s14 = smov 128   ;;  %s2517_s8 = smov 8  }
 0x7e3   :  { %2162 = dma.vmem_to_hbm [thread:$0]  %s2157_s25, 256, %s3280_s10, [#allocation6], %s2516_s14, %s2516_s14, %s2517_s8  }
 0x7e4   :  { %2500 = dma.done.wait [#allocation6], 256  }
 0x7e5   :  { %2501 = vsyncadd [#allocation6], 4294967040 }
 0x7e6   :  { %2166 = vsyncpa [#allocation6], 1 }

</bundles_post_ra>
